<compile_context>
chip_gen: v7x
topology: tpu7x:2x2x1
jax: 0.10.0
libtpu: 0.0.40
codegen_flags: <defaults>
</compile_context>

<pallas_src>
import functools

import jax
import jax.numpy as jnp
from jax.experimental import pallas as pl
from jax.experimental.pallas import tpu as pltpu

_VMEM = pl.BlockSpec(memory_space=pltpu.MemorySpace.VMEM)


# ---------------------------------------------------------------------------
# Fused BasicBlock kernel
# ---------------------------------------------------------------------------
def _basic_block_kernel(x_ref, w1_ref, w2_ref, g1_ref, b1_ref, g2_ref, b2_ref,
                        out_ref, *, n, ho, wo, cout, hp2, stride, eps,
                        compute_dtype):
    cc = 2 * cout                 # packed complex channels of conv outputs
    lanes = wo * cc               # slab lane width (= out_ref.shape[1])
    m = n * ho * wo               # #samples per channel for batch statistics

    # Pooling matrix: pooled[l] = mean over all lanes carrying the same channel
    # (lane l holds channel l % cc).  Lets BN stats come out already lane-tiled.
    li = jax.lax.broadcasted_iota(jnp.int32, (lanes, lanes), 0)
    lj = jax.lax.broadcasted_iota(jnp.int32, (lanes, lanes), 1)
    pool = ((li % cc) == (lj % cc)).astype(jnp.float32) * (1.0 / wo)

    def conv_slab(x3, w_ref, rows_out, s):
        # x3: (N, rows_in, L) f32 slab.  One packed-complex matmul per conv:
        # lane-concat the 3 H-taps, the W-taps / complex multiply live in w_ref.
        taps = [x3[:, kh:kh + (rows_out - 1) * s + 1:s, :] for kh in range(3)]
        col = jnp.concatenate(taps, axis=-1)                  # (N, rows_out, 3*L)
        col = col.reshape(n * rows_out, col.shape[-1]).astype(compute_dtype)
        return jnp.dot(col, w_ref[...], preferred_element_type=jnp.float32)

    def bn_relu(y, g_ref, b_ref, valid):
        # y: (R, lanes) f32.  Training-mode BatchNorm2d on real & imag channels
        # (biased variance, eps) fused with the following ReLU.  `valid` masks
        # the conv1 halo rows out of the statistics.
        ym = y if valid is None else jnp.where(valid, y, 0.0)
        mean = jnp.dot(jnp.sum(ym, axis=0, keepdims=True), pool,
                       preferred_element_type=jnp.float32) / m
        cen = (ym - mean) if valid is None else jnp.where(valid, y - mean, 0.0)
        var = jnp.dot(jnp.sum(cen * cen, axis=0, keepdims=True), pool,
                      preferred_element_type=jnp.float32) / m
        scale = g_ref[...] * jax.lax.rsqrt(var + eps)
        return jnp.maximum((y - mean) * scale + b_ref[...], 0.0)

    # ---- ComplexConv2d #1 (also emits conv2's H halo rows) + CBN1 + CReLU ----
    x1 = x_ref[...].astype(jnp.float32)                       # (N, Hin, W*2*Cin)
    y1 = conv_slab(x1, w1_ref, hp2, stride)                   # (N*hp2, Wo*2*Cout)
    hp = jax.lax.broadcasted_iota(jnp.int32, (n * hp2, 1), 0) % hp2
    valid = jnp.logical_and(hp >= 1, hp <= ho)                # interior rows
    y1 = bn_relu(y1, g1_ref, b1_ref, valid)
    y1 = jnp.where(valid, y1, 0.0)                            # halo rows -> zero pad

    # ---- ComplexConv2d #2 + CBN2 + final complex_relu ------------------------
    y2 = conv_slab(y1.reshape(n, hp2, lanes), w2_ref, ho, 1)  # (N*Ho, Wo*2*Cout)
    y2 = bn_relu(y2, g2_ref, b2_ref, None)

    out_ref[...] = y2                                         # lane-dense HBM store


# ---------------------------------------------------------------------------
# Wrapper-side parameter packing (runs in XLA, folded by jit)
# ---------------------------------------------------------------------------
def _pack_conv_weight_slab(wr, wi, w_in, w_out, stride, compute_dtype):
    """Packed complex + block-Toeplitz weight for the slab matmul.

    Rows: (kh, x, [real_in | imag_in]) with x the unpadded input W position.
    Cols: (wo, [real_out | imag_out]).  Zero padding in W falls out of the
    selection x == wo*stride + kw - 1 (out-of-range taps simply never match).
    """
    cin, cout = wr.shape[2], wr.shape[3]
    cc_in, cc_out = 2 * cin, 2 * cout
    top = jnp.concatenate([wr, wi], axis=-1)       # real input rows -> [+Wr | +Wi]
    bot = jnp.concatenate([-wi, wr], axis=-1)      # imag input rows -> [-Wi | +Wr]
    wp = jnp.concatenate([top, bot], axis=2)       # (3, 3, 2*Cin, 2*Cout)

    x_idx = jnp.arange(w_in)[:, None]
    o_idx = jnp.arange(w_out)[None, :]
    blocks = []
    for kh in range(3):
        blk = jnp.zeros((w_in * cc_in, w_out * cc_out), jnp.float32)
        for kw in range(3):
            sel = (x_idx == o_idx * stride + kw - 1).astype(jnp.float32)
            blk = blk + jnp.kron(sel, wp[kh, kw])
        blocks.append(blk)
    return jnp.concatenate(blocks, axis=0).astype(compute_dtype)


def init_basic_block_params(key, in_channels, out_channels):
    k1, k2, k3, k4 = jax.random.split(key, 4)

    def conv_w(k, cin, cout):
        std = (2.0 / (cin * 9)) ** 0.5
        return std * jax.random.normal(k, (3, 3, cin, cout), jnp.float32)

    ones = jnp.ones((1, out_channels), jnp.float32)
    zeros = jnp.zeros((1, out_channels), jnp.float32)
    # TODO(synk): the reference builds self.shortcut in __init__ but never applies
    # it in forward(); its parameters are intentionally not created here.
    return {
        "w1_r": conv_w(k1, in_channels, out_channels),
        "w1_i": conv_w(k2, in_channels, out_channels),
        "w2_r": conv_w(k3, out_channels, out_channels),
        "w2_i": conv_w(k4, out_channels, out_channels),
        "bn1_gamma_r": ones, "bn1_beta_r": zeros,
        "bn1_gamma_i": ones, "bn1_beta_i": zeros,
        "bn2_gamma_r": ones, "bn2_beta_r": zeros,
        "bn2_gamma_i": ones, "bn2_beta_i": zeros,
    }


def basic_block_forward(x1, x2, params, *, stride=1, eps=1e-5,
                        compute_dtype=jnp.bfloat16):
    n, cin, h, w = x1.shape
    cout = params["w1_r"].shape[-1]
    ho = (h - 1) // stride + 1                    # (h + 2 - 3)//stride + 1
    wo = (w - 1) // stride + 1
    hp2 = ho + 2                                  # conv1 also emits conv2's H halo
    top, bot = stride + 1, ho * stride + 2 - h
    hin = top + h + bot
    assert hin == (ho + 1) * stride + 3

    # NCHW -> NHWC, pack [real | imag] channels, pad H for the halo trick, flatten
    # (W, 2*Cin) into the lane dim.  Single input tensor; no intermediate of the
    # block ever touches HBM.
    xr = jnp.transpose(x1, (0, 2, 3, 1)).astype(jnp.float32)
    xi = jnp.transpose(x2, (0, 2, 3, 1)).astype(jnp.float32)
    xc = jnp.concatenate([xr, xi], axis=-1)                     # (N, H, W, 2*Cin)
    xp = jnp.pad(xc, ((0, 0), (top, bot), (0, 0), (0, 0)))
    x_in = xp.reshape(n, hin, w * 2 * cin)

    w1 = _pack_conv_weight_slab(params["w1_r"], params["w1_i"], w, wo, stride,
                                compute_dtype)
    w2 = _pack_conv_weight_slab(params["w2_r"], params["w2_i"], wo, wo, 1,
                                compute_dtype)

    def lane_tile(v_r, v_i):                       # per-channel -> per-lane vector
        return jnp.tile(jnp.concatenate([v_r, v_i], axis=-1),
                        (1, wo)).astype(jnp.float32)

    g1 = lane_tile(params["bn1_gamma_r"], params["bn1_gamma_i"])
    b1 = lane_tile(params["bn1_beta_r"], params["bn1_beta_i"])
    g2 = lane_tile(params["bn2_gamma_r"], params["bn2_gamma_i"])
    b2 = lane_tile(params["bn2_beta_r"], params["bn2_beta_i"])

    kernel = functools.partial(
        _basic_block_kernel, n=n, ho=ho, wo=wo, cout=cout, hp2=hp2,
        stride=stride, eps=eps, compute_dtype=compute_dtype)

    out = pl.pallas_call(
        kernel,
        out_shape=jax.ShapeDtypeStruct((n * ho, wo * 2 * cout), jnp.float32),
        in_specs=[_VMEM] * 7,
        out_specs=_VMEM,
    )(x_in, w1, w2, g1, b1, g2, b2)

    # Lane-dense slab -> NCHW real / imag outputs (wrapper-side layout plumbing).
    y = out.reshape(n, ho, wo, 2 * cout)
    yr = jnp.transpose(y[..., :cout], (0, 3, 1, 2))
    yi = jnp.transpose(y[..., cout:], (0, 3, 1, 2))
    return yr, yi


if __name__ == "__main__":
    key = jax.random.PRNGKey(0)
    kx1, kx2, kp = jax.random.split(key, 3)
    N, C, H, W = 2, 4, 16, 16  # in_channels = out_channels = 4, stride = 1
    x1 = jax.random.normal(kx1, (N, C, H, W), jnp.float32)
    x2 = jax.random.normal(kx2, (N, C, H, W), jnp.float32)
    params = init_basic_block_params(kp, in_channels=C, out_channels=C)

    fwd = jax.jit(functools.partial(basic_block_forward, stride=1))
    y1, y2 = fwd(x1, x2, params)
    jax.block_until_ready((y1, y2))

    assert y1.shape == (N, C, H, W) and y2.shape == (N, C, H, W)
    assert y1.dtype == jnp.float32 and y2.dtype == jnp.float32
    assert bool(jnp.all(y1 >= 0)) and bool(jnp.all(y2 >= 0))  # final complex_relu
    print("KERNEL_OK")
</pallas_src>

<mosaic_0001>
module attributes {stable_mosaic.version = 11 : i64} {
  func.func @_basic_block_kernel(%arg0: memref<2x20x128xf32, #tpu.memory_space<vmem>>, %arg1: memref<384x128xbf16, #tpu.memory_space<vmem>>, %arg2: memref<384x128xbf16, #tpu.memory_space<vmem>>, %arg3: memref<1x128xf32, #tpu.memory_space<vmem>>, %arg4: memref<1x128xf32, #tpu.memory_space<vmem>>, %arg5: memref<1x128xf32, #tpu.memory_space<vmem>>, %arg6: memref<1x128xf32, #tpu.memory_space<vmem>>, %arg7: memref<32x128xf32, #tpu.memory_space<vmem>>) attributes {dimension_semantics = [], scalar_prefetch = 0 : i64, scratch_operands = 0 : i64, tpu.core_type = #tpu.core_type<tc>} {
    %0 = tpu.iota {dimensions = array<i32: 0>} : vector<128x128xi32>
    %1 = tpu.iota {dimensions = array<i32: 1>} : vector<128x128xi32>
    %c8_i32 = arith.constant 8 : i32
    %c0_i32 = arith.constant 0 : i32
    %2 = arith.cmpi eq, %c8_i32, %c0_i32 : i32
    %c1_i32 = arith.constant 1 : i32
    %3 = arith.select %2, %c1_i32, %c8_i32 : i32
    %4 = vector.broadcast %3 : i32 to vector<128x128xi32>
    %5 = arith.remsi %0, %4 : vector<128x128xi32>
    %c0_i32_0 = arith.constant 0 : i32
    %6 = vector.broadcast %c0_i32_0 : i32 to vector<128x128xi32>
    %7 = arith.cmpi ne, %5, %6 : vector<128x128xi32>
    %c0_i32_1 = arith.constant 0 : i32
    %8 = vector.broadcast %c0_i32_1 : i32 to vector<128x128xi32>
    %9 = arith.cmpi slt, %5, %8 : vector<128x128xi32>
    %c0_i32_2 = arith.constant 0 : i32
    %10 = arith.cmpi slt, %3, %c0_i32_2 : i32
    %11 = vector.broadcast %10 : i1 to vector<128x128xi1>
    %12 = vector.broadcast %11 : vector<128x128xi1> to vector<128x128xi1>
    %13 = arith.xori %9, %12 : vector<128x128xi1>
    %14 = arith.andi %13, %7 : vector<128x128xi1>
    %15 = vector.broadcast %3 : i32 to vector<128x128xi32>
    %16 = arith.addi %5, %15 : vector<128x128xi32>
    %17 = arith.select %14, %16, %5 : vector<128x128xi1>, vector<128x128xi32>
    %c8_i32_3 = arith.constant 8 : i32
    %c0_i32_4 = arith.constant 0 : i32
    %18 = arith.cmpi eq, %c8_i32_3, %c0_i32_4 : i32
    %c1_i32_5 = arith.constant 1 : i32
    %19 = arith.select %18, %c1_i32_5, %c8_i32_3 : i32
    %20 = vector.broadcast %19 : i32 to vector<128x128xi32>
    %21 = arith.remsi %1, %20 : vector<128x128xi32>
    %c0_i32_6 = arith.constant 0 : i32
    %22 = vector.broadcast %c0_i32_6 : i32 to vector<128x128xi32>
    %23 = arith.cmpi ne, %21, %22 : vector<128x128xi32>
    %c0_i32_7 = arith.constant 0 : i32
    %24 = vector.broadcast %c0_i32_7 : i32 to vector<128x128xi32>
    %25 = arith.cmpi slt, %21, %24 : vector<128x128xi32>
    %c0_i32_8 = arith.constant 0 : i32
    %26 = arith.cmpi slt, %19, %c0_i32_8 : i32
    %27 = vector.broadcast %26 : i1 to vector<128x128xi1>
    %28 = vector.broadcast %27 : vector<128x128xi1> to vector<128x128xi1>
    %29 = arith.xori %25, %28 : vector<128x128xi1>
    %30 = arith.andi %29, %23 : vector<128x128xi1>
    %31 = vector.broadcast %19 : i32 to vector<128x128xi32>
    %32 = arith.addi %21, %31 : vector<128x128xi32>
    %33 = arith.select %30, %32, %21 : vector<128x128xi1>, vector<128x128xi32>
    %34 = arith.cmpi eq, %17, %33 : vector<128x128xi32>
    %35 = arith.extui %34 : vector<128x128xi1> to vector<128x128xi32>
    %36 = arith.sitofp %35 : vector<128x128xi32> to vector<128x128xf32>
    %cst = arith.constant 6.250000e-02 : f32
    %37 = vector.broadcast %cst : f32 to vector<128x128xf32>
    %38 = arith.mulf %36, %37 : vector<128x128xf32>
    %c0 = arith.constant 0 : index
    %c0_9 = arith.constant 0 : index
    %c0_10 = arith.constant 0 : index
    %39 = vector.load %arg0[%c0, %c0_9, %c0_10] : memref<2x20x128xf32, #tpu.memory_space<vmem>>, vector<2x20x128xf32>
    %40 = vector.extract_strided_slice %39 {offsets = [0, 0, 0], sizes = [2, 18, 128], strides = [1, 1, 1]} : vector<2x20x128xf32> to vector<2x18x128xf32>
    %41 = vector.extract_strided_slice %39 {offsets = [0, 1, 0], sizes = [2, 18, 128], strides = [1, 1, 1]} : vector<2x20x128xf32> to vector<2x18x128xf32>
    %42 = vector.extract_strided_slice %39 {offsets = [0, 2, 0], sizes = [2, 18, 128], strides = [1, 1, 1]} : vector<2x20x128xf32> to vector<2x18x128xf32>
    %43 = tpu.concatenate %40, %41, %42 in 2 : vector<2x18x128xf32>, vector<2x18x128xf32>, vector<2x18x128xf32> -> vector<2x18x384xf32>
    %44 = vector.shape_cast %43 : vector<2x18x384xf32> to vector<36x384xf32>
    %45 = arith.truncf %44 : vector<36x384xf32> to vector<36x384xbf16>
    %c0_11 = arith.constant 0 : index
    %c0_12 = arith.constant 0 : index
    %46 = vector.load %arg1[%c0_11, %c0_12] : memref<384x128xbf16, #tpu.memory_space<vmem>>, vector<384x128xbf16>
    %cst_13 = arith.constant dense<0.000000e+00> : vector<36x128xf32>
    %47 = tpu.matmul %45, %46, %cst_13 {dimension_numbers = #tpu.dot_dimension_numbers<[1], [0], [0], [1], [0, 0, 1, 1], [], []>} : vector<36x384xbf16>, vector<384x128xbf16>, vector<36x128xf32> -> vector<36x128xf32>
    %48 = tpu.iota {dimensions = array<i32: 0>} : vector<36x1xi32>
    %c18_i32 = arith.constant 18 : i32
    %c0_i32_14 = arith.constant 0 : i32
    %49 = arith.cmpi eq, %c18_i32, %c0_i32_14 : i32
    %c1_i32_15 = arith.constant 1 : i32
    %50 = arith.select %49, %c1_i32_15, %c18_i32 : i32
    %51 = vector.broadcast %50 : i32 to vector<36x1xi32>
    %52 = arith.remsi %48, %51 : vector<36x1xi32>
    %c0_i32_16 = arith.constant 0 : i32
    %53 = vector.broadcast %c0_i32_16 : i32 to vector<36x1xi32>
    %54 = arith.cmpi ne, %52, %53 : vector<36x1xi32>
    %c0_i32_17 = arith.constant 0 : i32
    %55 = vector.broadcast %c0_i32_17 : i32 to vector<36x1xi32>
    %56 = arith.cmpi slt, %52, %55 : vector<36x1xi32>
    %c0_i32_18 = arith.constant 0 : i32
    %57 = arith.cmpi slt, %50, %c0_i32_18 : i32
    %58 = vector.broadcast %57 : i1 to vector<36x1xi1>
    %59 = vector.broadcast %58 : vector<36x1xi1> to vector<36x1xi1>
    %60 = arith.xori %56, %59 : vector<36x1xi1>
    %61 = arith.andi %60, %54 : vector<36x1xi1>
    %62 = vector.broadcast %50 : i32 to vector<36x1xi32>
    %63 = arith.addi %52, %62 : vector<36x1xi32>
    %64 = arith.select %61, %63, %52 : vector<36x1xi1>, vector<36x1xi32>
    %c1_i32_19 = arith.constant 1 : i32
    %65 = vector.broadcast %c1_i32_19 : i32 to vector<36x1xi32>
    %66 = arith.cmpi sge, %64, %65 : vector<36x1xi32>
    %c16_i32 = arith.constant 16 : i32
    %67 = vector.broadcast %c16_i32 : i32 to vector<36x1xi32>
    %68 = arith.cmpi sle, %64, %67 : vector<36x1xi32>
    %69 = arith.andi %66, %68 : vector<36x1xi1>
    %cst_20 = arith.constant 0.000000e+00 : f32
    %70 = vector.shape_cast %69 : vector<36x1xi1> to vector<36x1xi1>
    %71 = vector.broadcast %70 : vector<36x1xi1> to vector<36x128xi1>
    %72 = vector.broadcast %cst_20 : f32 to vector<36x128xf32>
    %73 = arith.select %71, %47, %72 : vector<36x128xi1>, vector<36x128xf32>
    %cst_21 = arith.constant dense<0.000000e+00> : vector<128xf32>
    %74 = vector.multi_reduction <add>, %73, %cst_21 [0] : vector<36x128xf32> to vector<128xf32>
    %75 = vector.shape_cast %74 : vector<128xf32> to vector<1x128xf32>
    %cst_22 = arith.constant dense<0.000000e+00> : vector<1x128xf32>
    %76 = tpu.matmul %75, %38, %cst_22 {dimension_numbers = #tpu.dot_dimension_numbers<[1], [0], [0], [1], [0, 0, 1, 1], [], []>} : vector<1x128xf32>, vector<128x128xf32>, vector<1x128xf32> -> vector<1x128xf32>
    %cst_23 = arith.constant 5.120000e+02 : f32
    %77 = vector.broadcast %cst_23 : f32 to vector<1x128xf32>
    %78 = arith.divf %76, %77 : vector<1x128xf32>
    %79 = vector.broadcast %78 : vector<1x128xf32> to vector<36x128xf32>
    %80 = arith.subf %47, %79 : vector<36x128xf32>
    %cst_24 = arith.constant 0.000000e+00 : f32
    %81 = vector.shape_cast %69 : vector<36x1xi1> to vector<36x1xi1>
    %82 = vector.broadcast %81 : vector<36x1xi1> to vector<36x128xi1>
    %83 = vector.broadcast %cst_24 : f32 to vector<36x128xf32>
    %84 = arith.select %82, %80, %83 : vector<36x128xi1>, vector<36x128xf32>
    %85 = arith.mulf %84, %84 : vector<36x128xf32>
    %cst_25 = arith.constant dense<0.000000e+00> : vector<128xf32>
    %86 = vector.multi_reduction <add>, %85, %cst_25 [0] : vector<36x128xf32> to vector<128xf32>
    %87 = vector.shape_cast %86 : vector<128xf32> to vector<1x128xf32>
    %cst_26 = arith.constant dense<0.000000e+00> : vector<1x128xf32>
    %88 = tpu.matmul %87, %38, %cst_26 {dimension_numbers = #tpu.dot_dimension_numbers<[1], [0], [0], [1], [0, 0, 1, 1], [], []>} : vector<1x128xf32>, vector<128x128xf32>, vector<1x128xf32> -> vector<1x128xf32>
    %cst_27 = arith.constant 5.120000e+02 : f32
    %89 = vector.broadcast %cst_27 : f32 to vector<1x128xf32>
    %90 = arith.divf %88, %89 : vector<1x128xf32>
    %c0_28 = arith.constant 0 : index
    %c0_29 = arith.constant 0 : index
    %91 = vector.load %arg3[%c0_28, %c0_29] : memref<1x128xf32, #tpu.memory_space<vmem>>, vector<1x128xf32>
    %cst_30 = arith.constant 9.99999974E-6 : f32
    %92 = vector.broadcast %cst_30 : f32 to vector<1x128xf32>
    %93 = arith.addf %90, %92 : vector<1x128xf32>
    %94 = math.rsqrt %93 : vector<1x128xf32>
    %95 = arith.mulf %91, %94 : vector<1x128xf32>
    %96 = vector.broadcast %78 : vector<1x128xf32> to vector<36x128xf32>
    %97 = arith.subf %47, %96 : vector<36x128xf32>
    %98 = vector.broadcast %95 : vector<1x128xf32> to vector<36x128xf32>
    %99 = arith.mulf %97, %98 : vector<36x128xf32>
    %c0_31 = arith.constant 0 : index
    %c0_32 = arith.constant 0 : index
    %100 = vector.load %arg4[%c0_31, %c0_32] : memref<1x128xf32, #tpu.memory_space<vmem>>, vector<1x128xf32>
    %101 = vector.broadcast %100 : vector<1x128xf32> to vector<36x128xf32>
    %102 = arith.addf %99, %101 : vector<36x128xf32>
    %cst_33 = arith.constant 0.000000e+00 : f32
    %103 = vector.broadcast %cst_33 : f32 to vector<36x128xf32>
    %104 = arith.maximumf %102, %103 : vector<36x128xf32>
    %cst_34 = arith.constant 0.000000e+00 : f32
    %105 = vector.shape_cast %69 : vector<36x1xi1> to vector<36x1xi1>
    %106 = vector.broadcast %105 : vector<36x1xi1> to vector<36x128xi1>
    %107 = vector.broadcast %cst_34 : f32 to vector<36x128xf32>
    %108 = arith.select %106, %104, %107 : vector<36x128xi1>, vector<36x128xf32>
    %109 = vector.shape_cast %108 : vector<36x128xf32> to vector<2x18x128xf32>
    %110 = vector.extract_strided_slice %109 {offsets = [0, 0, 0], sizes = [2, 16, 128], strides = [1, 1, 1]} : vector<2x18x128xf32> to vector<2x16x128xf32>
    %111 = vector.extract_strided_slice %109 {offsets = [0, 1, 0], sizes = [2, 16, 128], strides = [1, 1, 1]} : vector<2x18x128xf32> to vector<2x16x128xf32>
    %112 = vector.extract_strided_slice %109 {offsets = [0, 2, 0], sizes = [2, 16, 128], strides = [1, 1, 1]} : vector<2x18x128xf32> to vector<2x16x128xf32>
    %113 = tpu.concatenate %110, %111, %112 in 2 : vector<2x16x128xf32>, vector<2x16x128xf32>, vector<2x16x128xf32> -> vector<2x16x384xf32>
    %114 = vector.shape_cast %113 : vector<2x16x384xf32> to vector<32x384xf32>
    %115 = arith.truncf %114 : vector<32x384xf32> to vector<32x384xbf16>
    %c0_35 = arith.constant 0 : index
    %c0_36 = arith.constant 0 : index
    %116 = vector.load %arg2[%c0_35, %c0_36] : memref<384x128xbf16, #tpu.memory_space<vmem>>, vector<384x128xbf16>
    %cst_37 = arith.constant dense<0.000000e+00> : vector<32x128xf32>
    %117 = tpu.matmul %115, %116, %cst_37 {dimension_numbers = #tpu.dot_dimension_numbers<[1], [0], [0], [1], [0, 0, 1, 1], [], []>} : vector<32x384xbf16>, vector<384x128xbf16>, vector<32x128xf32> -> vector<32x128xf32>
    %cst_38 = arith.constant dense<0.000000e+00> : vector<128xf32>
    %118 = vector.multi_reduction <add>, %117, %cst_38 [0] : vector<32x128xf32> to vector<128xf32>
    %119 = vector.shape_cast %118 : vector<128xf32> to vector<1x128xf32>
    %cst_39 = arith.constant dense<0.000000e+00> : vector<1x128xf32>
    %120 = tpu.matmul %119, %38, %cst_39 {dimension_numbers = #tpu.dot_dimension_numbers<[1], [0], [0], [1], [0, 0, 1, 1], [], []>} : vector<1x128xf32>, vector<128x128xf32>, vector<1x128xf32> -> vector<1x128xf32>
    %cst_40 = arith.constant 5.120000e+02 : f32
    %121 = vector.broadcast %cst_40 : f32 to vector<1x128xf32>
    %122 = arith.divf %120, %121 : vector<1x128xf32>
    %123 = vector.broadcast %122 : vector<1x128xf32> to vector<32x128xf32>
    %124 = arith.subf %117, %123 : vector<32x128xf32>
    %125 = arith.mulf %124, %124 : vector<32x128xf32>
    %cst_41 = arith.constant dense<0.000000e+00> : vector<128xf32>
    %126 = vector.multi_reduction <add>, %125, %cst_41 [0] : vector<32x128xf32> to vector<128xf32>
    %127 = vector.shape_cast %126 : vector<128xf32> to vector<1x128xf32>
    %cst_42 = arith.constant dense<0.000000e+00> : vector<1x128xf32>
    %128 = tpu.matmul %127, %38, %cst_42 {dimension_numbers = #tpu.dot_dimension_numbers<[1], [0], [0], [1], [0, 0, 1, 1], [], []>} : vector<1x128xf32>, vector<128x128xf32>, vector<1x128xf32> -> vector<1x128xf32>
    %cst_43 = arith.constant 5.120000e+02 : f32
    %129 = vector.broadcast %cst_43 : f32 to vector<1x128xf32>
    %130 = arith.divf %128, %129 : vector<1x128xf32>
    %c0_44 = arith.constant 0 : index
    %c0_45 = arith.constant 0 : index
    %131 = vector.load %arg5[%c0_44, %c0_45] : memref<1x128xf32, #tpu.memory_space<vmem>>, vector<1x128xf32>
    %cst_46 = arith.constant 9.99999974E-6 : f32
    %132 = vector.broadcast %cst_46 : f32 to vector<1x128xf32>
    %133 = arith.addf %130, %132 : vector<1x128xf32>
    %134 = math.rsqrt %133 : vector<1x128xf32>
    %135 = arith.mulf %131, %134 : vector<1x128xf32>
    %136 = vector.broadcast %122 : vector<1x128xf32> to vector<32x128xf32>
    %137 = arith.subf %117, %136 : vector<32x128xf32>
    %138 = vector.broadcast %135 : vector<1x128xf32> to vector<32x128xf32>
    %139 = arith.mulf %137, %138 : vector<32x128xf32>
    %c0_47 = arith.constant 0 : index
    %c0_48 = arith.constant 0 : index
    %140 = vector.load %arg6[%c0_47, %c0_48] : memref<1x128xf32, #tpu.memory_space<vmem>>, vector<1x128xf32>
    %141 = vector.broadcast %140 : vector<1x128xf32> to vector<32x128xf32>
    %142 = arith.addf %139, %141 : vector<32x128xf32>
    %cst_49 = arith.constant 0.000000e+00 : f32
    %143 = vector.broadcast %cst_49 : f32 to vector<32x128xf32>
    %144 = arith.maximumf %142, %143 : vector<32x128xf32>
    %c0_50 = arith.constant 0 : index
    %c0_51 = arith.constant 0 : index
    %145 = vector.load %arg7[%c0_50, %c0_51] : memref<32x128xf32, #tpu.memory_space<vmem>>, vector<32x128xf32>
    tpu.vector_store %arg7[%c0_50, %c0_51], %144 {strides = array<i32>} : memref<32x128xf32, #tpu.memory_space<vmem>>, vector<32x128xf32>,
    return
  }
}

</mosaic_0001>

<bundles_post_ra>
// kernel: neg.2
= control target key start
LH: loop header
LB: loop body
LE: loop exit
PB: predicated region body
PF: predicated region fallthrough
CT: control target
= control target key end

     0   :  { %s152_s0 = inlined_call_operand.vmem [shape: f32[3,3,4,4], index: 0, kind: input, shape index: {}]   ;;  %s153_s1 = inlined_call_operand.vmem [shape: f32[3,3,4,4], index: 1, kind: output, shape index: {}]  }
   0x1   :  { %v2_v0 = vld [vmem:[%s152_s0] sm:$0xf]  ;;  %v72_v1 = vld [vmem:[%s152_s0 + $0xc] sm:$0xf]  ;;  %v74_v2 = vld [vmem:[%s152_s0 + $0x18] sm:$0xf] }
   0x2   :  { %v5_v3 = vxor.u32 2147483648, %v2_v0  ;;  %v12_v4 = vxor.u32 2147483648, %v72_v1  ;;  %v20_v5 = vxor.u32 2147483648, %v74_v2  ;;  %v76_v6 = vld [vmem:[%s152_s0 + $0x4] sm:$0xf] }
   0x3   :  { %v28_v7 = vxor.u32 2147483648, %v76_v6  ;;  %v78_v8 = vld [vmem:[%s152_s0 + $0x10] sm:$0xf]  ;;  %v80_v9 = vld [vmem:[%s152_s0 + $0x1c] sm:$0xf] }
   0x4   :  { %7 = vst [vmem:[%s153_s1] sm:$0xf] %v5_v3  ;;  %73 = vst [vmem:[%s153_s1 + $0xc] sm:$0xf] %v12_v4  ;;  %v36_v10 = vxor.u32 2147483648, %v78_v8  ;;  %v44_v11 = vxor.u32 2147483648, %v80_v9 }
   0x5   :  { %75 = vst [vmem:[%s153_s1 + $0x18] sm:$0xf] %v20_v5  ;;  %v82_v12 = vld [vmem:[%s152_s0 + $0x8] sm:$0xf]  ;;  %v84_v13 = vld [vmem:[%s152_s0 + $0x14] sm:$0xf] }
   0x6   :  { %77 = vst [vmem:[%s153_s1 + $0x4] sm:$0xf] %v28_v7  ;;  %v52_v14 = vxor.u32 2147483648, %v82_v12  ;;  %v60_v15 = vxor.u32 2147483648, %v84_v13  ;;  %v86_v16 = vld [vmem:[%s152_s0 + $0x20] sm:$0xf] }
   0x7   :  { %79 = vst [vmem:[%s153_s1 + $0x10] sm:$0xf] %v36_v10  ;;  %81 = vst [vmem:[%s153_s1 + $0x1c] sm:$0xf] %v44_v11  ;;  %v68_v17 = vxor.u32 2147483648, %v86_v16 }
   0x8   :  { %83 = vst [vmem:[%s153_s1 + $0x8] sm:$0xf] %v52_v14  ;;  %85 = vst [vmem:[%s153_s1 + $0x14] sm:$0xf] %v60_v15 }
   0x9   :  { %87 = vst [vmem:[%s153_s1 + $0x20] sm:$0xf] %v68_v17 }

// kernel: basic_block_forward.1
= control target key start
LH: loop header
LB: loop body
LE: loop exit
PB: predicated region body
PF: predicated region fallthrough
CT: control target
= control target key end

     0   :  { %v2672_v1 = vmov 0.0   ;;  %vm3306_vm0 = vmmov 0   ;;  %v27_v17 = vlaneseq  ;;  %v2674_v18 = vmov 1983009808   ;;  %s3298_s1 = inlined_call_operand.vmem [shape: bf16[384,128], index: 1, kind: input, shape index: {}]   ;;  %s3299_s0 = inlined_call_operand.vmem [shape: f32[2,20,128], index: 0, kind: input, shape index: {}]   ;;  %s3300_s2 = inlined_call_operand.vmem [shape: bf16[384,128], index: 2, kind: input, shape index: {}]   ;;  %s3301_s3 = inlined_call_operand.vmem [shape: f32[1,128], index: 3, kind: input, shape index: {}]   ;;  %s3302_s4 = inlined_call_operand.vmem [shape: f32[1,128], index: 4, kind: input, shape index: {}]   ;;  %s3303_s5 = inlined_call_operand.vmem [shape: f32[1,128], index: 5, kind: input, shape index: {}]   ;;  %s3304_s6 = inlined_call_operand.vmem [shape: f32[1,128], index: 6, kind: input, shape index: {}]   ;;  %s3305_s7 = inlined_call_operand.vmem [shape: f32[32,128], index: 7, kind: output, shape index: {}]  }
   0x1   :  { %v2620_v0 = vld [vmem:[%s3298_s1 + $0x40] sm:$0xff]   ;;  %2322 = vmatprep.subr.bf16.mxu1 %v2672_v1  ;;  %2338 = vmatprep.mubr.msk.bf16.mxu1 %vm3306_vm0, %v2672_v1  ;;  %v2623_v4 = vld [vmem:[%s3298_s1 + $0x48] sm:$0xff]   ;;  %v2626_v7 = vld [vmem:[%s3298_s1 + $0x50] sm:$0xff]   ;;  %v352_v19 = vunpack.c.l.s4 %v2674_v18  ;;  %vm3308_vm1 = vcmask 1046528   ;;  %vm337_vm2 = vcmask 1045504  }
   0x2   :  { %v2621_v2 = vld [vmem:[%s3298_s1] sm:$0xff]   ;;  %2171 = vmatprep.subr.bf16.mxu0 %v2620_v0  ;;  %v2624_v5 = vld [vmem:[%s3298_s1 + $0x8] sm:$0xff]   ;;  %v2627_v8 = vld [vmem:[%s3298_s1 + $0x10] sm:$0xff]   ;;  %v2781_v23 = vshrl.u32 %v27_v17, 7 }
   0x3   :  { %v2622_v3 = vld [vmem:[%s3298_s1 + $0x80] sm:$0xff]   ;;  %2172 = vmatpush3.bf16.msra.mxu0 %v2621_v2  ;;  %v2625_v6 = vld [vmem:[%s3298_s1 + $0x88] sm:$0xff]   ;;  %v2628_v9 = vld [vmem:[%s3298_s1 + $0x90] sm:$0xff]   ;;  %v353_v24 = vunpack.c.0.s8 %v352_v19 }
   0x4   :  { %2323 = vmatpush3.bf16.msra.mxu1 %v2622_v3  ;;  %2173 = vmatprep.subr.bf16.mxu0 %v2623_v4  ;;  %v2629_v10 = vld [vmem:[%s3298_s1 + $0x58] sm:$0xff]   ;;  %v2632_v13 = vld [vmem:[%s3298_s1 + $0x60] sm:$0xff]   ;;  %v2635_v16 = vld [vmem:[%s3298_s1 + $0x68] sm:$0xff]  }
   0x5   :  { %2324 = vmatprep.subr.bf16.mxu1 %v2672_v1  ;;  %v2630_v11 = vld [vmem:[%s3298_s1 + $0x18] sm:$0xff]   ;;  %v2633_v14 = vld [vmem:[%s3298_s1 + $0x20] sm:$0xff]   ;;  %v2636_v20 = vld [vmem:[%s3298_s1 + $0x28] sm:$0xff]   ;;  %v2805_v31 = vsub.s32 %v353_v24, %v2781_v23 }
   0x6   :  { %v2631_v12 = vld [vmem:[%s3298_s1 + $0x98] sm:$0xff]   ;;  %v2634_v15 = vld [vmem:[%s3298_s1 + $0xa0] sm:$0xff]   ;;  %v2637_v21 = vld [vmem:[%s3298_s1 + $0xa8] sm:$0xff]  }
   0x7   :  { %2174 = vmatpush3.bf16.msra.mxu0 %v2624_v5  ;;  %v2638_v22 = vld [vmem:[%s3298_s1 + $0x70] sm:$0xff]   ;;  %v2641_v27 = vld [vmem:[%s3298_s1 + $0x78] sm:$0xff]   ;;  %v314_v28 = vld [vmem:[%s3299_s0] sm:$0xff] }
   0x8   :  { %2325 = vmatpush3.bf16.msra.mxu1 %v2625_v6  ;;  %2175 = vmatprep.subr.bf16.mxu0 %v2626_v7  ;;  %v2639_v25 = vld [vmem:[%s3298_s1 + $0x30] sm:$0xff]   ;;  %v315_v29 = vld [vmem:[%s3299_s0 + $0x8] sm:$0xff]  ;;  %v327_v32 = vrot.slane %v314_v28, 1  ;;  %v338_v35 = vrot.slane %v314_v28, 2  ;;  %v2812_v36 = vld [vmem:[%s3299_s0 + $0x18] sm:$0xff] }
   0x9   :  { %2326 = vmatprep.subr.bf16.mxu1 %v2672_v1  ;;  %v2640_v26 = vld [vmem:[%s3298_s1 + $0xb0] sm:$0xff]   ;;  %v328_v33 = vrot.slane %v315_v29, 1  ;;  %v2817_v37 = vld [vmem:[%s3299_s0 + $0x20] sm:$0xff]  ;;  %v339_v38 = vrot.slane %v315_v29, 2  ;;  %v2823_v40 = vld [vmem:[%s3299_s0 + $0x28] sm:$0xf] }
   0xa   :  { %v2802_v30 = vld [vmem:[%s3299_s0 + $0x10] sm:$0xf]  ;;  %v332_v41 = vrot.slane %v2812_v36, 1  ;;  %v333_v42 = vrot.slane %v2817_v37, 1  ;;  %v2642_v43 = vld [vmem:[%s3298_s1 + $0x38] sm:$0xff]   ;;  %v335_v46 = vrot.slane %v2823_v40, 1 }
   0xb   :  { %2176 = vmatpush3.bf16.msra.mxu0 %v2627_v8  ;;  %v330_v34 = vrot.slane %v2802_v30, 1  ;;  %v341_v39 = vrot.slane %v2802_v30, 2  ;;  %v329_v44 = vsel %vm3308_vm1, %v327_v32, %v328_v33  ;;  %v343_v47 = vrot.slane %v2812_v36, 2  ;;  %v2643_v48 = vld [vmem:[%s3298_s1 + $0xb8] sm:$0xff]  }
   0xc   :  { %2327 = vmatpush3.bf16.msra.mxu1 %v2628_v9  ;;  %2177 = vmatprep.subr.bf16.mxu0 %v2629_v10  ;;  %v348_v49 = vcombine.low %v314_v28, %v329_v44  ;;  %v349_v50 = vcombine.high %v314_v28, %v329_v44  ;;  %v344_v52 = vrot.slane %v2817_v37, 2  ;;  %v340_v54 = vsel %vm337_vm2, %v338_v35, %v339_v38 }
   0xd   :  { %2328 = vmatprep.subr.bf16.mxu1 %v2672_v1  ;;  %v331_v45 = vsel %vm3308_vm1, %v328_v33, %v330_v34  ;;  %v342_v55 = vsel %vm337_vm2, %v339_v38, %v341_v39  ;;  %v334_v56 = vsel %vm3308_vm1, %v332_v41, %v333_v42  ;;  %v350_v60 = vcombine.high %v340_v54, %v340_v54 }
   0xe   :  { %v383_v51 = vcombine.low %v315_v29, %v331_v45  ;;  %v384_v53 = vcombine.high %v315_v29, %v331_v45  ;;  %v357_v57 = vrot.slane %v348_v49, %v2805_v31  ;;  %v364_v58 = vrot.slane %v349_v50, %v2805_v31 }
   0xf   :  { %2178 = vmatpush3.bf16.msra.mxu0 %v2630_v11  ;;  %v371_v62 = vrot.slane %v340_v54, %v2805_v31  ;;  %v385_v63 = vcombine.high %v342_v55, %v342_v55  ;;  %v406_v0 = vrot.slane %v342_v55, %v2805_v31  ;;  %v378_v5 = vrot.slane %v350_v60, %v2805_v31 }
  0x10   :  { %2329 = vmatpush3.bf16.msra.mxu1 %v2631_v12  ;;  %2179 = vmatprep.subr.bf16.mxu0 %v2632_v13  ;;  %v392_v59 = vrot.slane %v383_v51, %v2805_v31  ;;  %v399_v61 = vrot.slane %v384_v53, %v2805_v31  ;;  %v530_v2 = vrot.slane %v357_v57, %v2805_v31 }
  0x11   :  { %2330 = vmatprep.subr.bf16.mxu1 %v2672_v1  ;;  %v544_v3 = vrot.slane %v364_v58, %v2805_v31  ;;  %v413_v7 = vrot.slane %v385_v63, %v2805_v31  ;;  %v537_v8 = vrot.slane %v371_v62, %v2805_v31  ;;  %v572_v9 = vrot.slane %v406_v0, %v2805_v31 }
  0x12   :  { %v565_v4 = vrot.slane %v392_v59, %v2805_v31  ;;  %v579_v6 = vrot.slane %v399_v61, %v2805_v31  ;;  %v551_v12 = vrot.slane %v378_v5, %v2805_v31  ;;  %v336_v13 = vsel %vm3308_vm1, %v333_v42, %v335_v46 }
  0x13   :  { %2180 = vmatpush3.bf16.msra.mxu0 %v2633_v14  ;;  %v553_v10 = vcombine.high %v530_v2, %v544_v3  ;;  %v552_v11 = vcombine.low %v530_v2, %v544_v3  ;;  %v345_v18 = vsel %vm337_vm2, %v343_v47, %v344_v52  ;;  %v469_v41 = vcombine.low %v2817_v37, %v336_v13 }
  0x14   :  { %2331 = vmatpush3.bf16.msra.mxu1 %v2634_v15  ;;  %2181 = vmatprep.subr.bf16.mxu0 %v2635_v16  ;;  %v588_v14 = vcombine.high %v565_v4, %v579_v6  ;;  %v587_v15 = vcombine.low %v565_v4, %v579_v6  ;;  %v586_v16 = vrot.slane %v413_v7, %v2805_v31 }
  0x15   :  { %2332 = vmatprep.subr.bf16.mxu1 %v2672_v1  ;;  %v554_v19 = vcombine.low %v537_v8, %v551_v12  ;;  %v436_v32 = vcombine.high %v345_v18, %v345_v18  ;;  %v478_v47 = vrot.slane %v469_v41, %v2805_v31 }
  0x16   :  { %v693_v24 = vpack.c.bf16 %v588_v14, %v553_v10 }
  0x17   :  { %2182 = vmatpush3.bf16.msra.mxu0 %v2636_v20  ;;  %v346_v20 = vrot.slane %v2823_v40, 2  ;;  %v464_v42 = vrot.slane %v436_v32, %v2805_v31  ;;  %v50_v32 = vand.u32 7, %v2781_v23 }
  0x18   :  { %2333 = vmatpush3.bf16.msra.mxu1 %v2637_v21  ;;  %2183 = vmatprep.subr.bf16.mxu0 %v2638_v22  ;;  %v418_v21 = vcombine.low %v2802_v30, %v330_v34  ;;  %v434_v22 = vcombine.low %v2812_v36, %v334_v56  ;;  %v457_v34 = vrot.slane %v345_v18, %v2805_v31 }
  0x19   :  { %2334 = vmatprep.subr.bf16.mxu1 %v2672_v1  ;;  %v347_v28 = vsel %vm337_vm2, %v344_v52, %v346_v20  ;;  %925 = vmatprep.mubr.bf16.mxu0 %v693_v24  ;;  %v504_v30 = vcombine.low %v2823_v40, %v335_v46  ;;  %v518_v46 = vrot.slane %v346_v20, %v2805_v31 }
  0x1a   :  { %v425_v29 = vrot.slane %v418_v21, %v2805_v31  ;;  %v443_v33 = vrot.slane %v434_v22, %v2805_v31  ;;  %v471_v49 = vcombine.high %v347_v28, %v347_v28 }
  0x1b   :  { %2184 = vmatpush3.bf16.msra.mxu0 %v2639_v25  ;;  %v692_v25 = vpack.c.bf16 %v587_v15, %v552_v11  ;;  %v511_v40 = vrot.slane %v504_v30, %v2805_v31 }
  0x1c   :  { %2335 = vmatpush3.bf16.msra.mxu1 %v2640_v26  ;;  %2185 = vmatprep.subr.bf16.mxu0 %v2641_v27  ;;  %v589_v26 = vcombine.low %v572_v9, %v586_v16  ;;  %v435_v27 = vcombine.high %v2812_v36, %v334_v56  ;;  %v470_v36 = vcombine.high %v2817_v37, %v336_v13 }
  0x1d   :  { %2336 = vmatprep.subr.bf16.mxu1 %v2672_v1  ;;  %v2111_v44 = vcombine.low %v425_v29, %v443_v33  ;;  %v466_v45 = vcombine.high %v443_v33, %v457_v34  ;;  %v499_v55 = vrot.slane %v471_v49, %v2805_v31  ;;  %v519_v14 = vcombine.low %v511_v40, %v518_v46 }
  0x1e   :  { %v694_v35 = vpack.c.bf16 %v589_v26, %v554_v19  ;;  %v450_v38 = vrot.slane %v435_v27, %v2805_v31  ;;  %v485_v51 = vrot.slane %v470_v36, %v2805_v31  ;;  %v45_v29 = vand.u32 127, %v27_v17 }
  0x1f   :  { %2186 = vmatpush3.bf16.msra.mxu0 %v2642_v43  ;;  %v492_v43 = vrot.slane %v347_v28, %v2805_v31  ;;  %v600_v52 = vrot.slane %v2111_v44, %v2805_v31  ;;  %v2120_v21 = vcombine.high %v499_v55, %v519_v14  ;;  %v2907_v28 = vadd.s32 8, %v2781_v23 }
  0x20   :  { %2337 = vmatpush3.bf16.msra.mxu1 %v2643_v48  ;;  %v432_v48 = vrot.slane %v341_v39, %v2805_v31  ;;  %v468_v50 = vcombine.high %v450_v38, %v464_v42  ;;  %v467_v37 = vcombine.low %v450_v38, %v464_v42  ;;  %v2113_v54 = vcombine.low %v466_v45, %v450_v38 }
  0x21   :  { %v501_v53 = vcombine.high %v478_v47, %v492_v43  ;;  %v500_v56 = vcombine.low %v478_v47, %v492_v43  ;;  %v502_v61 = vcombine.low %v485_v51, %v499_v55  ;;  %v503_v3 = vcombine.high %v485_v51, %v499_v55 }
  0x22   :  { %926 = vmatmul.mubr.bf16.vlgmr.msra.gmra.mrb[0].mxu0 %v692_v25  ;;  %v2115_v57 = vcombine.low %v468_v50, %v478_v47  ;;  %v2112_v58 = vcombine.low %v432_v48, %v457_v34  ;;  %v2114_v59 = vcombine.high %v457_v34, %v467_v37  ;;  %v614_v39 = vrot.slane %v2113_v54, %v2805_v31 }
  0x23   :  { %2339 = vmatmul.mubr.bf16.vlgmr.msra.gmra.mrb[0].mxu1 %v694_v35  ;;  %v2117_v60 = vcombine.low %v501_v53, %v485_v51  ;;  %v2116_v62 = vcombine.high %v464_v42, %v500_v56  ;;  %v2118_v7 = vcombine.high %v492_v43, %v502_v61  ;;  %v2119_v13 = vcombine.low %v503_v3, %v511_v40 }
  0x24   :  { %2342 = vmatprep.mubr.msk.bf16.mxu1 %vm3306_vm0, %v2672_v1  ;;  %v635_v63 = vrot.slane %v2115_v57, %v2805_v31  ;;  %v607_v0 = vrot.slane %v2112_v58, %v2805_v31  ;;  %v621_v2 = vrot.slane %v2114_v59, %v2805_v31  ;;  %v623_v4 = vcombine.high %v600_v52, %v614_v39 }
  0x25   :  { %v649_v5 = vrot.slane %v2117_v60, %v2805_v31  ;;  %v622_v6 = vcombine.low %v600_v52, %v614_v39  ;;  %v642_v8 = vrot.slane %v2116_v62, %v2805_v31  ;;  %v656_v12 = vrot.slane %v2118_v7, %v2805_v31 }
  0x26   :  { %v624_v11 = vcombine.low %v607_v0, %v621_v2  ;;  %v668_v19 = vrot.slane %v2119_v13, %v2805_v31  ;;  %v675_v20 = vrot.slane %v2120_v21, %v2805_v31  ;;  %v57_v33 = vand.u32 7, %v2907_v28 }
  0x27   :  { %v658_v9 = vcombine.high %v635_v63, %v649_v5  ;;  %v657_v10 = vcombine.low %v635_v63, %v649_v5  ;;  %v659_v18 = vcombine.low %v642_v8, %v656_v12  ;;  %v2912_v35 = vand.u32 7, %v45_v29 }
  0x28   :  { %v676_v24 = vcombine.high %v668_v19, %v668_v19  ;;  %v698_v26 = vpack.c.bf16 %v668_v19, %v668_v19  ;;  %v700_v27 = vpack.c.bf16 %v675_v20, %v675_v20  ;;  %v2675_v38 = vmov 0.0|0.0  }
  0x29   :  { %v696_v15 = vpack.c.bf16 %v658_v9, %v623_v4  ;;  %v695_v16 = vpack.c.bf16 %v657_v10, %v622_v6  ;;  %v697_v22 = vpack.c.bf16 %v659_v18, %v624_v11  ;;  %vm250_vm3 = vcmp.eq.s32.totalorder %v50_v32, %v2912_v35  ;;  %2510 = vmatprep.subr.bf16.mxu0 %v2675_v38 }
  0x2a   :  { %v699_v25 = vpack.c.bf16 %v676_v24, %v676_v24  ;;  %vm251_vm4 = vcmp.eq.s32.totalorder %v57_v33, %v2912_v35  ;;  %2534 = vmatprep.subr.bf16.mxu1 %v2675_v38  ;;  %v2095_v34 = vsel %vm250_vm3, 1.0, %v2672_v1  ;;  %v2921_v36 = vadd.s32 16, %v2781_v23 }
  0x2b   :  { %933 = vmatprep.mubr.bf16.mxu0 %v696_v15  ;;  %2343 = vmatmul.mubr.bf16.gmra.mrb[4].mxu1 %v697_v22  ;;  %v2096_v41 = vsel %vm251_vm4, 1.0, %v2672_v1  ;;  %v298_v17 = vmul.f32 0.0625, %v2095_v34  ;;  %v2924_v43 = vadd.s32 24, %v2781_v23  ;;  %v2931_v48 = vadd.s32 32, %v2781_v23 }
  0x2c   :  { %934 = vmatmul.mubr.bf16.gmra.mrb[4].mxu0 %v695_v16  ;;  %2346 = vmatprep.mubr.msk.bf16.mxu1 %vm3306_vm0, %v2672_v1  ;;  %v299_v42 = vmul.f32 0.0625, %v2096_v41  ;;  %v64_v45 = vand.u32 7, %v2921_v36  ;;  %v33_v49 = vadd.s32 40, %v2781_v23  ;;  %v34_v53 = vadd.s32 48, %v2781_v23 }
  0x2d   :  { %941 = vmatprep.mubr.bf16.mxu0 %v699_v25  ;;  %v71_v47 = vand.u32 7, %v2924_v43  ;;  %v78_v52 = vand.u32 7, %v2931_v48  ;;  %v35_v59 = vadd.s32 56, %v2781_v23  ;;  %v36_v63 = vadd.s32 64, %v2781_v23 }
  0x2e   :  { %v2926_v44 = vpack.c.bf16 %v299_v42, %v298_v17  ;;  %vm252_vm5 = vcmp.eq.s32.totalorder %v64_v45, %v2912_v35  ;;  %v85_v55 = vand.u32 7, %v33_v49  ;;  %v92_v30 = vand.u32 7, %v34_v53 }
  0x2f   :  { %vm253_vm6 = vcmp.eq.s32.totalorder %v71_v47, %v2912_v35  ;;  %v2097_v50 = vsel %vm252_vm5, 1.0, %v2672_v1  ;;  %vm254_vm7 = vcmp.eq.s32.totalorder %v78_v52, %v2912_v35  ;;  %v99_v61 = vand.u32 7, %v35_v59 }
  0x30   :  { %2512 = vmatpush3.bf16.msra.mxu0 %v2926_v44  ;;  %2536 = vmatpush3.bf16.msra.mxu1 %v2926_v44  ;;  %v2098_v51 = vsel %vm253_vm6, 1.0, %v2672_v1  ;;  %v300_v37 = vmul.f32 0.0625, %v2097_v50  ;;  %v2099_v56 = vsel %vm254_vm7, 1.0, %v2672_v1  ;;  %vm255_vm8 = vcmp.eq.s32.totalorder %v85_v55, %v2912_v35 }
  0x31   :  { %2513 = vmatprep.subr.bf16.mxu0 %v2675_v38  ;;  %2537 = vmatprep.subr.bf16.mxu1 %v2675_v38  ;;  %v301_v54 = vmul.f32 0.0625, %v2098_v51  ;;  %v302_v58 = vmul.f32 0.0625, %v2099_v56  ;;  %v2100_v39 = vsel %vm255_vm8, 1.0, %v2672_v1  ;;  %vm256_vm9 = vcmp.eq.s32.totalorder %v92_v30, %v2912_v35 }
  0x32   :  { %v303_v60 = vmul.f32 0.0625, %v2100_v39  ;;  %v2101_v62 = vsel %vm256_vm9, 1.0, %v2672_v1  ;;  %v37_v0 = vadd.s32 72, %v2781_v23  ;;  %vm257_vm10 = vcmp.eq.s32.totalorder %v99_v61, %v2912_v35 }
  0x33   :  { %2347 = vmatmul.mubr.bf16.gmra.mrb[8].mxu1 %v700_v27  ;;  %v2946_v57 = vpack.c.bf16 %v301_v54, %v300_v37  ;;  %v304_v3 = vmul.f32 0.0625, %v2101_v62  ;;  %v106_v4 = vand.u32 7, %v36_v63  ;;  %v2102_v6 = vsel %vm257_vm10, 1.0, %v2672_v1 }
  0x34   :  { %942 = vmatmul.mubr.bf16.gmra.mrb[8].mxu0 %v698_v26  ;;  %2417 = vmatprep.mubr.msk.f32.mxu1 %vm3306_vm0, %v2672_v1  ;;  %v2959_v2 = vpack.c.bf16 %v303_v60, %v302_v58  ;;  %v113_v5 = vand.u32 7, %v37_v0  ;;  %v38_v7 = vadd.s32 80, %v2781_v23  ;;  %v305_v8 = vmul.f32 0.0625, %v2102_v6 }
  0x35   :  { %2382 = vmatprep.mubr.msk.f32.mxu0 %vm3306_vm0, %v2672_v1  ;;  %2515 = vmatpush3.bf16.msra.mxu0 %v2946_v57  ;;  %vm258_vm11 = vcmp.eq.s32.totalorder %v106_v4, %v2912_v35  ;;  %v39_v40 = vadd.s32 88, %v2781_v23  ;;  %v40_v15 = vadd.s32 96, %v2781_v23  ;;  %v41_v16 = vadd.s32 104, %v2781_v23 }
  0x36   :  { %2539 = vmatpush3.bf16.msra.mxu1 %v2946_v57  ;;  %2516 = vmatprep.subr.bf16.mxu0 %v2675_v38  ;;  %vm259_vm12 = vcmp.eq.s32.totalorder %v113_v5, %v2912_v35  ;;  %v2103_v46 = vsel %vm258_vm11, 1.0, %v2672_v1  ;;  %v2972_v9 = vpack.c.bf16 %v305_v8, %v304_v3  ;;  %v120_v12 = vand.u32 7, %v38_v7 }
  0x37   :  { %2540 = vmatprep.subr.bf16.mxu1 %v2675_v38  ;;  %v2104_v10 = vsel %vm259_vm12, 1.0, %v2672_v1  ;;  %v306_v11 = vmul.f32 0.0625, %v2103_v46  ;;  %v127_v14 = vand.u32 7, %v39_v40  ;;  %v134_v21 = vand.u32 7, %v40_v15 }
  0x38   :  { %v307_v13 = vmul.f32 0.0625, %v2104_v10  ;;  %vm260_vm13 = vcmp.eq.s32.totalorder %v120_v12, %v2912_v35  ;;  %v141_v20 = vand.u32 7, %v41_v16  ;;  %v42_v25 = vadd.s32 112, %v2781_v23 }
  0x39   :  { %2518 = vmatpush3.bf16.msra.mxu0 %v2959_v2  ;;  %vm261_vm14 = vcmp.eq.s32.totalorder %v127_v14, %v2912_v35  ;;  %v2105_v19 = vsel %vm260_vm13, 1.0, %v2672_v1  ;;  %vm262_vm15 = vcmp.eq.s32.totalorder %v134_v21, %v2912_v35  ;;  %v43_v27 = vadd.s32 120, %v2781_v23 }
  0x3a   :  { %2542 = vmatpush3.bf16.msra.mxu1 %v2959_v2  ;;  %2519 = vmatprep.subr.bf16.mxu0 %v2675_v38  ;;  %v2981_v18 = vpack.c.bf16 %v307_v13, %v306_v11  ;;  %v2106_v22 = vsel %vm261_vm14, 1.0, %v2672_v1  ;;  %v308_v24 = vmul.f32 0.0625, %v2105_v19  ;;  %vm263_vm2 = vcmp.eq.s32.totalorder %v141_v20, %v2912_v35 }
  0x3b   :  { %2543 = vmatprep.subr.bf16.mxu1 %v2675_v38  ;;  %v309_v26 = vmul.f32 0.0625, %v2106_v22  ;;  %v2107_v29 = vsel %vm262_vm15, 1.0, %v2672_v1  ;;  %v148_v32 = vand.u32 7, %v42_v25  ;;  %v2108_v34 = vsel %vm263_vm2, 1.0, %v2672_v1 }
  0x3c   :  { %v310_v41 = vmul.f32 0.0625, %v2107_v29  ;;  %v155_v17 = vand.u32 7, %v43_v27  ;;  %v311_v42 = vmul.f32 0.0625, %v2108_v34 }
  0x3d   :  { %2521 = vmatpush3.bf16.msra.mxu0 %v2972_v9  ;;  %v2995_v33 = vpack.c.bf16 %v309_v26, %v308_v24  ;;  %vm264_vm3 = vcmp.eq.s32.totalorder %v148_v32, %v2912_v35  ;;  %v3022_v53 = vmul.u32.u64.low 3817748708, %v2781_v23  ;;  %v3023_v54 = vmul.u32.u64.high 3817748708, %v2781_v23, %v3022_v53 }
  0x3e   :  { %2545 = vmatpush3.bf16.msra.mxu1 %v2972_v9  ;;  %2522 = vmatprep.subr.bf16.mxu0 %v2675_v38  ;;  %vm265_vm4 = vcmp.eq.s32.totalorder %v155_v17, %v2912_v35  ;;  %v2109_v45 = vsel %vm264_vm3, 1.0, %v2672_v1  ;;  %v3003_v47 = vpack.c.bf16 %v311_v42, %v310_v41 }
  0x3f   :  { %2546 = vmatprep.subr.bf16.mxu1 %v2675_v38  ;;  %v2110_v49 = vsel %vm265_vm4, 1.0, %v2672_v1  ;;  %v312_v50 = vmul.f32 0.0625, %v2109_v45  ;;  %v3018_v35 = vmul.u32.u64.low 3817748708, %v2907_v28  ;;  %v3019_v37 = vmul.u32.u64.high 3817748708, %v2907_v28, %v3018_v35 }
  0x40   :  { %v313_v51 = vmul.f32 0.0625, %v2110_v49  ;;  %v3026_v55 = vmul.u32.u64.low 3817748708, %v2921_v36  ;;  %v3027_v56 = vmul.u32.u64.high 3817748708, %v2921_v36, %v3026_v55  ;;  %v1011_v39 = vshrl.u32 %v3023_v54, 4 }
  0x41   :  { %2524 = vmatpush3.bf16.msra.mxu0 %v2981_v18  ;;  %v3030_v58 = vmul.u32.u64.low 3817748708, %v2924_v43  ;;  %v3031_v59 = vmul.u32.u64.high 3817748708, %v2924_v43, %v3030_v58  ;;  %v1022_v30 = vshrl.u32 %v3019_v37, 4 }
  0x42   :  { %2548 = vmatpush3.bf16.msra.mxu1 %v2981_v18  ;;  %2525 = vmatprep.subr.bf16.mxu0 %v2675_v38  ;;  %v3010_v52 = vpack.c.bf16 %v313_v51, %v312_v50  ;;  %v3036_v60 = vmul.u32.u64.low 3817748708, %v2931_v48  ;;  %v3037_v61 = vmul.u32.u64.high 3817748708, %v2931_v48, %v3036_v60  ;;  %v1033_v62 = vshrl.u32 %v3027_v56, 4 }
  0x43   :  { %2549 = vmatprep.subr.bf16.mxu1 %v2675_v38  ;;  %v1023_v63 = vmul.u32 18, %v1022_v30  ;;  %v1012_v0 = vmul.u32 18, %v1011_v39  ;;  %v1044_v4 = vshrl.u32 %v3031_v59, 4 }
  0x44   :  { %v1034_v3 = vmul.u32 18, %v1033_v62  ;;  %v1055_v46 = vshrl.u32 %v3037_v61, 4 }
  0x45   :  { %2527 = vmatpush3.bf16.msra.mxu0 %v2995_v33  ;;  %v1024_v5 = vsub.s32 %v2907_v28, %v1023_v63  ;;  %v1013_v40 = vsub.s32 %v2781_v23, %v1012_v0  ;;  %v1045_v14 = vmul.u32 18, %v1044_v4 }
  0x46   :  { %2551 = vmatpush3.bf16.msra.mxu1 %v2995_v33  ;;  %2528 = vmatprep.subr.bf16.mxu0 %v2675_v38  ;;  %v1035_v13 = vsub.s32 %v2921_v36, %v1034_v3  ;;  %v1056_v24 = vmul.u32 18, %v1055_v46 }
  0x47   :  { %2552 = vmatprep.subr.bf16.mxu1 %v2675_v38  ;;  %vm1061_vm5 = vcmp.ne.s32.totalorder %v1024_v5, 0  ;;  %vm1066_vm6 = vcmp.lt.s32.totalorder %v1024_v5, 0  ;;  %vm1060_vm7 = vcmp.ne.s32.totalorder %v1013_v40, 0  ;;  %vm1065_vm8 = vcmp.lt.s32.totalorder %v1013_v40, 0 }
  0x48   :  { %v1076_v22 = vadd.s32 18, %v1024_v5  ;;  %vm1071_vm9 = vmand %vm1066_vm6, %vm1061_vm5  ;;  %vm1062_vm10 = vcmp.ne.s32.totalorder %v1035_v13, 0  ;;  %vm1067_vm11 = vcmp.lt.s32.totalorder %v1035_v13, 0  ;;  %v1046_v36 = vsub.s32 %v2924_v43, %v1045_v14 }
  0x49   :  { %2530 = vmatpush3.bf16.msra.mxu0 %v3003_v47  ;;  %v1075_v25 = vadd.s32 18, %v1013_v40  ;;  %vm1070_vm12 = vmand %vm1065_vm8, %vm1060_vm7  ;;  %v1077_v26 = vadd.s32 18, %v1035_v13  ;;  %v1057_v29 = vsub.s32 %v2931_v48, %v1056_v24 }
  0x4a   :  { %2554 = vmatpush3.bf16.msra.mxu1 %v3003_v47  ;;  %2531 = vmatprep.subr.bf16.mxu0 %v2675_v38  ;;  %v1081_v27 = vsel %vm1071_vm9, %v1076_v22, %v1024_v5  ;;  %vm1072_vm13 = vmand %vm1067_vm11, %vm1062_vm10  ;;  %vm1063_vm14 = vcmp.ne.s32.totalorder %v1046_v36, 0  ;;  %vm1068_vm15 = vcmp.lt.s32.totalorder %v1046_v36, 0  ;;  %v1078_v41 = vadd.s32 18, %v1046_v36 }
  0x4b   :  { %2555 = vmatprep.subr.bf16.mxu1 %v2675_v38  ;;  %v1080_v32 = vsel %vm1070_vm12, %v1075_v25, %v1013_v40  ;;  %vm1086_vm2 = vcmp.ge.s32.totalorder %v1081_v27, 1  ;;  %vm1091_vm3 = vcmp.le.s32.totalorder %v1081_v27, 16  ;;  %v1082_v34 = vsel %vm1072_vm13, %v1077_v26, %v1035_v13  ;;  %vm1073_vm4 = vmand %vm1068_vm15, %vm1063_vm14 }
  0x4c   :  { %vm1064_vm5 = vcmp.ne.s32.totalorder %v1057_v29, 0  ;;  %vm1069_vm6 = vcmp.lt.s32.totalorder %v1057_v29, 0  ;;  %vm1085_vm0 = vcmp.ge.s32.totalorder %v1080_v32, 1  ;;  %vm1090_vm1 = vcmp.le.s32.totalorder %v1080_v32, 16  ;;  %vm3051_vm7 = vmand %vm1086_vm2, %vm1091_vm3 }
  0x4d   :  { %2533 = vmatpush3.bf16.msra.mxu0 %v3010_v52  ;;  %vm1087_vm8 = vcmp.ge.s32.totalorder %v1082_v34, 1  ;;  %vm1092_vm9 = vcmp.le.s32.totalorder %v1082_v34, 16  ;;  %v1079_v48 = vadd.s32 18, %v1057_v29  ;;  %v1083_v35 = vsel %vm1073_vm4, %v1078_v41, %v1046_v36  ;;  %vm1074_vm10 = vmand %vm1069_vm6, %vm1064_vm5 }
  0x4e   :  { %2557 = vmatpush3.bf16.msra.mxu1 %v3010_v52  ;;  %vm3056_vm11 = vmand %vm1085_vm0, %vm1090_vm1  ;;  %vm1088_vm13 = vcmp.ge.s32.totalorder %v1083_v35, 1  ;;  %vm1093_vm14 = vcmp.le.s32.totalorder %v1083_v35, 16  ;;  %vm1118_vm3 = vcmask 1043456   ;;  %vm3319_vm4 = vcmask 1046528  }
  0x4f   :  { %vm3060_vm12 = vmand %vm1087_vm8, %vm1092_vm9  ;;  %v1084_v39 = vsel %vm1074_vm10, %v1079_v48, %v1057_v29  ;;  %v3086_v29 = vsub.s32 0, %v2781_v23  ;;  %vm3321_vm6 = vmmov 0  }
  0x50   :  { %vm3072_vm0 = vmand %vm1088_vm13, %vm1093_vm14  ;;  %vm1089_vm1 = vcmp.ge.s32.totalorder %v1084_v39, 1  ;;  %vm1094_vm15 = vcmp.le.s32.totalorder %v1084_v39, 16 }
  0x51   :  { %vm3078_vm2 = vmand %vm1089_vm1, %vm1094_vm15 }
  0x52   :  { %vm3320_vm5 = vmmov %vm3319_vm4 }
  0x53   :  { %vm3323_vm8 = vmmov %vm3319_vm4 }
  0xf5   :  { %v2187_v6 = vpop.f32.mrb[0].mxu0 }
  0xf6   :  { %v983_v7 = vpop.f32.mrb[0].mxu1  ;;  %v2188_v8 = vpop.f32.mrb[1].mxu0 }
  0xf7   :  { %v2189_v10 = vadd.f32 %v2188_v8, %v2187_v6  ;;  %v2340_v11 = vpop.f32.mrb[1].mxu1  ;;  %v2190_v12 = vpop.f32.mrb[2].mxu0 }
  0xf8   :  { %v986_v15 = vpop.f32.mrb[2].mxu1  ;;  %v2191_v16 = vpop.f32.mrb[3].mxu0 }
  0xf9   :  { %v3045_v19 = vadd.f32 %v2189_v10, %v983_v7  ;;  %v2192_v28 = vadd.f32 %v2191_v16, %v2190_v12  ;;  %v2341_v21 = vpop.f32.mrb[3].mxu1 }
  0xfb   :  { %v3047_v20 = vadd.f32 %v2192_v28, %v986_v15  ;;  %v1110_v61 = vsel %vm3056_vm11, %v3045_v19, 0.0 }
  0xfd   :  { %v1111_v30 = vsel %vm3051_vm7, %v3047_v20, 0.0 }
  0xfe   :  { %v991_v42 = vpop.f32.mrb[4].mxu1  ;;  %v1115_v63 = vadd.f32 %v1111_v30, %v1110_v61 }
  0xff   :  { %v2193_v43 = vpop.f32.mrb[4].mxu0  ;;  %v2344_v50 = vpop.f32.mrb[5].mxu1 }
 0x100   :  { %v2194_v45 = vpop.f32.mrb[5].mxu0  ;;  %v994_v53 = vpop.f32.mrb[6].mxu1 }
 0x101   :  { %v2195_v49 = vadd.f32 %v2194_v45, %v2193_v43  ;;  %v2196_v51 = vpop.f32.mrb[6].mxu0  ;;  %v2345_v59 = vpop.f32.mrb[7].mxu1 }
 0x102   :  { %v2197_v54 = vpop.f32.mrb[7].mxu0 }
 0x103   :  { %v992_v55 = vadd.f32 %v2195_v49, %v991_v42  ;;  %v2198_v58 = vadd.f32 %v2197_v54, %v2196_v51 }
 0x105   :  { %v995_v60 = vadd.f32 %v2198_v58, %v994_v53  ;;  %v1112_v62 = vsel %vm3060_vm12, %v992_v55, 0.0 }
 0x106   :  { %v999_v4 = vpop.f32.mrb[8].mxu1  ;;  %v1116_v6 = vadd.f32 %v1115_v63, %v1112_v62 }
 0x107   :  { %v2199_v3 = vpop.f32.mrb[8].mxu0  ;;  %v2348_v8 = vpop.f32.mrb[9].mxu1  ;;  %v1113_v46 = vsel %vm3072_vm0, %v995_v60, 0.0 }
 0x108   :  { %v2200_v5 = vpop.f32.mrb[9].mxu0  ;;  %v1002_v11 = vpop.f32.mrb[10].mxu1  ;;  %v1117_v15 = vadd.f32 %v1116_v6, %v1113_v46  ;;  %v2644_v8 = vld [vmem:[%s3300_s2 + $0x80] sm:$0xff]  }
 0x109   :  { %v2201_v7 = vadd.f32 %v2200_v5, %v2199_v3  ;;  %v2202_v40 = vpop.f32.mrb[10].mxu0  ;;  %v2349_v14 = vpop.f32.mrb[11].mxu1  ;;  %2420 = vmatprep.subr.bf16.mxu1 %v2644_v8  ;;  %v2646_v46 = vld [vmem:[%s3300_s2] sm:$0xff]   ;;  %v2647_v11 = vld [vmem:[%s3300_s2 + $0x88] sm:$0xff]  }
 0x10a   :  { %v2203_v12 = vpop.f32.mrb[11].mxu0  ;;  %v2645_v40 = vld [vmem:[%s3300_s2 + $0x40] sm:$0xff]   ;;  %v2650_v14 = vld [vmem:[%s3300_s2 + $0x90] sm:$0xff]  }
 0x10b   :  { %v1000_v13 = vadd.f32 %v2201_v7, %v999_v4  ;;  %2250 = vmatprep.subr.bf16.mxu0 %v2645_v40  ;;  %v2648_v12 = vld [vmem:[%s3300_s2 + $0x48] sm:$0xff]  }
 0x10d   :  { %v1114_v16 = vsel %vm3078_vm2, %v1000_v13, 0.0 }
 0x10e   :  { %v1119_v28 = vsel %vm1118_vm3, %v1114_v16, 0.0  ;;  %v2653_v16 = vld [vmem:[%s3300_s2 + $0x98] sm:$0xff]  }
 0x10f   :  { %v1120_v21 = vadd.f32 %v1119_v28, %v1117_v15  ;;  %v2651_v15 = vld [vmem:[%s3300_s2 + $0x50] sm:$0xff]  }
 0x110   :  { %v2652_v28 = vld [vmem:[%s3300_s2 + $0x10] sm:$0xff]  }
 0x111   :  { %v1121_v22 = vrot.slane %v1120_v21, 4 }
 0x113   :  { %v1122_v24 = vadd.f32 %v1121_v22, %v1120_v21  ;;  %v2654_v21 = vld [vmem:[%s3300_s2 + $0x58] sm:$0xff]   ;;  %v2656_v22 = vld [vmem:[%s3300_s2 + $0xa0] sm:$0xff]  }
 0x115   :  { %v1123_v36 = vrot.slane %v1122_v24, 2 }
 0x117   :  { %v1124_v25 = vadd.f32 %v1123_v36, %v1122_v24  ;;  %v2655_v24 = vld [vmem:[%s3300_s2 + $0x18] sm:$0xff]   ;;  %v2657_v36 = vld [vmem:[%s3300_s2 + $0x60] sm:$0xff]  }
 0x119   :  { %v1125_v26 = vrot.slane %v1124_v25, 1 }
 0x11b   :  { %v1126_v27 = vadd.f32 %v1125_v26, %v1124_v25  ;;  %v2659_v25 = vld [vmem:[%s3300_s2 + $0xa8] sm:$0xff]   ;;  %v2658_v26 = vld [vmem:[%s3300_s2 + $0x20] sm:$0xff]  }
 0x11d   :  { %2383 = vmatmul.mubr.f32.vlgmr.msra.gmra.mrb[12].mxu0 %v1126_v27  ;;  %v2660_v27 = vld [vmem:[%s3300_s2 + $0x68] sm:$0xff]  }
 0x11e   :  { %2251 = vmatpush3.bf16.msra.mxu0 %v2646_v46 }
 0x11f   :  { %2252 = vmatprep.subr.bf16.mxu0 %v2648_v12 }
 0x1f0   :  { %v1193_v32 = vpop.f32.mrb[12].mxu0 }
 0x1f1   :  { %v1198_v34 = vmul.f32 0.001953125, %v1193_v32  ;;  %v2384_v41 = vpop.f32.mrb[13].mxu0  ;;  %v2662_v32 = vld [vmem:[%s3300_s2 + $0xb0] sm:$0xff]  }
 0x1f2   :  { %v2663_v41 = vld [vmem:[%s3300_s2 + $0x70] sm:$0xff]  }
 0x1f3   :  { %v1202_v43 = vrot.slane %v1198_v34, %v3086_v29  ;;  %v2661_v34 = vld [vmem:[%s3300_s2 + $0x28] sm:$0xff]  }
 0x1f5   :  { %v3090_v42 = vsub.f32 %v3045_v19, %v1202_v43  ;;  %v3093_v45 = vsub.f32 %v3047_v20, %v1202_v43  ;;  %v3095_v48 = vsub.f32 %v992_v55, %v1202_v43  ;;  %v3097_v49 = vsub.f32 %v995_v60, %v1202_v43 }
 0x1f6   :  { %v3099_v50 = vsub.f32 %v1000_v13, %v1202_v43  ;;  %v2649_v13 = vld [vmem:[%s3300_s2 + $0x8] sm:$0xff]   ;;  %v2665_v43 = vld [vmem:[%s3300_s2 + $0xb8] sm:$0xff]  }
 0x1f7   :  { %v1208_v23 = vsel %vm3056_vm11, %v3090_v42, 0.0  ;;  %v1209_v51 = vsel %vm3051_vm7, %v3093_v45, 0.0  ;;  %v1210_v19 = vsel %vm3060_vm12, %v3095_v48, 0.0  ;;  %v1211_v54 = vsel %vm3072_vm0, %v3097_v49, 0.0  ;;  %2253 = vmatpush3.bf16.msra.mxu0 %v2649_v13 }
 0x1f8   :  { %v1212_v20 = vsel %vm3078_vm2, %v3099_v50, 0.0  ;;  %v1213_v35 = vmul.f32 %v1208_v23, %v1208_v23  ;;  %v1214_v53 = vmul.f32 %v1209_v51, %v1209_v51  ;;  %v1215_v55 = vmul.f32 %v1210_v19, %v1210_v19  ;;  %2254 = vmatprep.subr.bf16.mxu0 %v2651_v15  ;;  %v2664_v23 = vld [vmem:[%s3300_s2 + $0x30] sm:$0xff]   ;;  %v2666_v51 = vld [vmem:[%s3300_s2 + $0x78] sm:$0xff]  }
 0x1f9   :  { %v1217_v59 = vmul.f32 %v1212_v20, %v1212_v20  ;;  %v1216_v30 = vmul.f32 %v1211_v54, %v1211_v54  ;;  %v2667_v19 = vld [vmem:[%s3300_s2 + $0x38] sm:$0xff]  }
 0x1fa   :  { %v1218_v58 = vadd.f32 %v1214_v53, %v1213_v35 }
 0x1fb   :  { %v1221_v61 = vsel %vm1118_vm3, %v1217_v59, 0.0  ;;  %2255 = vmatpush3.bf16.msra.mxu0 %v2652_v28 }
 0x1fc   :  { %v1219_v39 = vadd.f32 %v1218_v58, %v1215_v55  ;;  %2256 = vmatprep.subr.bf16.mxu0 %v2654_v21  ;;  %v1300_v55 = vld [vmem:[%s3301_s3] sm:$0x1] }
 0x1fe   :  { %v1220_v60 = vadd.f32 %v1219_v39, %v1216_v30  ;;  %v2145_v39 = vld [vmem:[%s3302_s4] ss:$0 sm:$0xff] }
 0x1ff   :  { %2257 = vmatpush3.bf16.msra.mxu0 %v2655_v24 }
 0x200   :  { %v1222_v62 = vadd.f32 %v1221_v61, %v1220_v60  ;;  %2258 = vmatprep.subr.bf16.mxu0 %v2657_v36 }
 0x202   :  { %v1223_v63 = vrot.slane %v1222_v62, 4 }
 0x203   :  { %2259 = vmatpush3.bf16.msra.mxu0 %v2658_v26 }
 0x204   :  { %v1224_v3 = vadd.f32 %v1223_v63, %v1222_v62  ;;  %2260 = vmatprep.subr.bf16.mxu0 %v2660_v27 }
 0x206   :  { %v1225_v4 = vrot.slane %v1224_v3, 2 }
 0x207   :  { %2261 = vmatpush3.bf16.msra.mxu0 %v2661_v34 }
 0x208   :  { %v1226_v5 = vadd.f32 %v1225_v4, %v1224_v3  ;;  %2262 = vmatprep.subr.bf16.mxu0 %v2663_v41 }
 0x20a   :  { %v1227_v6 = vrot.slane %v1226_v5, 1 }
 0x20b   :  { %2263 = vmatpush3.bf16.msra.mxu0 %v2664_v23 }
 0x20c   :  { %v1228_v7 = vadd.f32 %v1227_v6, %v1226_v5  ;;  %2264 = vmatprep.subr.bf16.mxu0 %v2666_v51 }
 0x20e   :  { %2418 = vmatmul.mubr.f32.vlgmr.msra.gmra.mrb[12].mxu1 %v1228_v7 }
 0x20f   :  { %2421 = vmatpush3.bf16.msra.mxu1 %v2644_v8  ;;  %2265 = vmatpush3.bf16.msra.mxu0 %v2667_v19 }
 0x210   :  { %2422 = vmatprep.subr.bf16.mxu1 %v2647_v11  ;;  %2558 = vmatprep.subr.bf16.mxu0 %v2675_v38 }
 0x213   :  { %2423 = vmatpush3.bf16.msra.mxu1 %v2647_v11 }
 0x214   :  { %2424 = vmatprep.subr.bf16.mxu1 %v2650_v14 }
 0x217   :  { %2425 = vmatpush3.bf16.msra.mxu1 %v2650_v14 }
 0x218   :  { %2426 = vmatprep.subr.bf16.mxu1 %v2653_v16 }
 0x21b   :  { %2427 = vmatpush3.bf16.msra.mxu1 %v2653_v16 }
 0x21c   :  { %2428 = vmatprep.subr.bf16.mxu1 %v2656_v22 }
 0x21f   :  { %2429 = vmatpush3.bf16.msra.mxu1 %v2656_v22 }
 0x220   :  { %2430 = vmatprep.subr.bf16.mxu1 %v2659_v25 }
 0x223   :  { %2431 = vmatpush3.bf16.msra.mxu1 %v2659_v25 }
 0x224   :  { %2432 = vmatprep.subr.bf16.mxu1 %v2662_v32 }
 0x227   :  { %2433 = vmatpush3.bf16.msra.mxu1 %v2662_v32 }
 0x228   :  { %2434 = vmatprep.subr.bf16.mxu1 %v2665_v43 }
 0x22b   :  { %2435 = vmatpush3.bf16.msra.mxu1 %v2665_v43 }
 0x22c   :  { %2582 = vmatprep.subr.bf16.mxu1 %v2675_v38 }
 0x2e1   :  { %v1295_v20 = vpop.f32.mrb[12].mxu1 }
 0x2e2   :  { %v1299_v35 = vmul.f32 0.001953125, %v1295_v20  ;;  %v2419_v53 = vpop.f32.mrb[13].mxu1 }
 0x2e4   :  { %v1301_v54 = vadd.f32 1e-05, %v1299_v35 }
 0x2e6   :  { %2668 = vrsqrt.f32 %v1301_v54 }
 0x2f0   :  { %v2669_v58 = vpop.eup %2668 }
 0x2f1   :  { %v1303_v59 = vmul.f32 %v2669_v58, %v1300_v55 }
 0x2f3   :  { %v1308_v30 = vrot.slane %v1303_v59, %v3086_v29 }
 0x2f5   :  { %v1310_v60 = vmul.f32 %v1308_v30, %v3090_v42  ;;  %v1311_v61 = vmul.f32 %v1308_v30, %v3093_v45  ;;  %v1312_v62 = vmul.f32 %v1308_v30, %v3095_v48  ;;  %v1313_v63 = vmul.f32 %v1308_v30, %v3097_v49 }
 0x2f6   :  { %v1314_v3 = vmul.f32 %v1308_v30, %v3099_v50 }
 0x2f7   :  { %v1322_v4 = vadd.f32 %v2145_v39, %v1310_v60  ;;  %v1323_v5 = vadd.f32 %v2145_v39, %v1311_v61  ;;  %v1324_v6 = vadd.f32 %v2145_v39, %v1312_v62  ;;  %v1325_v7 = vadd.f32 %v2145_v39, %v1313_v63 }
 0x2f8   :  { %v1326_v8 = vadd.f32 %v2145_v39, %v1314_v3 }
 0x2f9   :  { %v1327_v40 = vmax.f32 %v1322_v4, 0.0  ;;  %v1328_v46 = vmax.f32 %v1323_v5, 0.0  ;;  %v1329_v11 = vmax.f32 %v1324_v6, 0.0  ;;  %v1330_v12 = vmax.f32 %v1325_v7, 0.0 }
 0x2fa   :  { %v1331_v13 = vmax.f32 %v1326_v8, 0.0 }
 0x2fb   :  { %v1332_v42 = vsel %vm3056_vm11, %v1327_v40, 0.0  ;;  %v1333_v45 = vsel %vm3051_vm7, %v1328_v46, 0.0  ;;  %v1334_v48 = vsel %vm3060_vm12, %v1329_v11, 0.0  ;;  %v1335_v49 = vsel %vm3072_vm0, %v1330_v12, 0.0  ;;  %vm3322_vm7 = vmmov %vm3319_vm4 }
 0x2fc   :  { %v1342_v50 = vcombine.high %v1332_v42, %v1332_v42  ;;  %v1349_v14 = vrot.slane %v1332_v42, %v2805_v31  ;;  %v1359_v15 = vcombine.high %v1333_v45, %v1333_v45  ;;  %v1366_v16 = vrot.slane %v1333_v45, %v2805_v31 }
 0x2fd   :  { %v1376_v28 = vcombine.high %v1334_v48, %v1334_v48  ;;  %v1383_v21 = vrot.slane %v1334_v48, %v2805_v31  ;;  %v1336_v37 = vsel %vm3078_vm2, %v1331_v13, 0.0  ;;  %v1393_v17 = vcombine.high %v1335_v49, %v1335_v49 }
 0x2fe   :  { %v1356_v22 = vrot.slane %v1342_v50, %v2805_v31  ;;  %v1357_v56 = vcombine.high %v1349_v14, %v1349_v14  ;;  %v1373_v24 = vrot.slane %v1359_v15, %v2805_v31  ;;  %v1374_v0 = vcombine.high %v1366_v16, %v1366_v16 }
 0x2ff   :  { %v1390_v36 = vrot.slane %v1376_v28, %v2805_v31  ;;  %v1400_v25 = vrot.slane %v1335_v49, %v2805_v31  ;;  %v1407_v26 = vrot.slane %v1393_v17, %v2805_v31  ;;  %v1416_v27 = vrot.slane %v1336_v37, %v2805_v31 }
 0x300   :  { %v1358_v32 = vcombine.high %v1356_v22, %v1356_v22  ;;  %v1375_v34 = vcombine.high %v1373_v24, %v1373_v24  ;;  %v1418_v41 = vcombine.low %v1349_v14, %v1357_v56  ;;  %v1435_v10 = vcombine.low %v1366_v16, %v1374_v0 }
 0x301   :  { %v1518_v43 = vcombine.low %v1357_v56, %v1356_v22  ;;  %v1535_v23 = vcombine.low %v1374_v0, %v1373_v24  ;;  %v1392_v51 = vcombine.high %v1390_v36, %v1390_v36  ;;  %v1408_v19 = vcombine.high %v1400_v25, %v1400_v25 }
 0x302   :  { %v1419_v20 = vcombine.low %v1356_v22, %v1358_v32  ;;  %v1436_v35 = vcombine.low %v1373_v24, %v1375_v34  ;;  %v1519_v53 = vcombine.low %v1358_v32, %v1366_v16  ;;  %v1536_v54 = vcombine.low %v1375_v34, %v1383_v21 }
 0x303   :  { %v1526_v55 = vrot.slane %v1518_v43, %v2805_v31  ;;  %v1543_v58 = vrot.slane %v1535_v23, %v2805_v31  ;;  %v1409_v59 = vcombine.high %v1407_v26, %v1407_v26  ;;  %v1417_v30 = vcombine.high %v1416_v27, %v1416_v27 }
 0x304   :  { %v1533_v39 = vrot.slane %v1519_v53, %v2805_v31  ;;  %v1550_v60 = vrot.slane %v1536_v54, %v2805_v31  ;;  %v1552_v61 = vcombine.low %v1390_v36, %v1392_v51  ;;  %v1553_v62 = vcombine.low %v1400_v25, %v1408_v19 }
 0x305   :  { %v1569_v63 = vcombine.low %v1407_v26, %v1409_v59  ;;  %v1570_v3 = vcombine.low %v1416_v27, %v1417_v30  ;;  %v1426_v4 = vrot.slane %v1418_v41, %v2805_v31  ;;  %v1433_v5 = vrot.slane %v1419_v20, %v2805_v31 }
 0x306   :  { %v1534_v6 = vcombine.low %v1526_v55, %v1533_v39  ;;  %v1551_v7 = vcombine.low %v1543_v58, %v1550_v60  ;;  %v1560_v8 = vrot.slane %v1552_v61, %v2805_v31  ;;  %v1567_v40 = vrot.slane %v1553_v62, %v2805_v31 }
 0x307   :  { %v1577_v46 = vrot.slane %v1569_v63, %v2805_v31  ;;  %v1584_v11 = vrot.slane %v1570_v3, %v2805_v31  ;;  %v1434_v12 = vcombine.low %v1426_v4, %v1433_v5  ;;  %v1443_v13 = vrot.slane %v1435_v10, %v2805_v31 }
 0x308   :  { %v1592_v42 = vpack.c.bf16 %v1551_v7, %v1534_v6  ;;  %v1568_v45 = vcombine.low %v1560_v8, %v1567_v40  ;;  %v1450_v48 = vrot.slane %v1436_v35, %v2805_v31  ;;  %v1496_v49 = vrot.slane %v1383_v21, %v2805_v31 }
 0x309   :  { %v1585_v50 = vcombine.low %v1577_v46, %v1584_v11  ;;  %v1391_v14 = vcombine.high %v1383_v21, %v1383_v21  ;;  %v1453_v15 = vcombine.low %v1392_v51, %v1400_v25  ;;  %v1504_v28 = vrot.slane %v1434_v12, 1 }
 0x30a   :  { %2436 = vmatprep.mubr.bf16.mxu1 %v1592_v42  ;;  %v1451_v16 = vcombine.low %v1443_v13, %v1450_v48  ;;  %v1469_v37 = vcombine.low %v1408_v19, %v1407_v26  ;;  %v1470_v17 = vcombine.low %v1409_v59, %v1416_v27  ;;  %v1507_v56 = vrot.slane %v1496_v49, 1 }
 0x30b   :  { %v1595_v22 = vpack.c.bf16 %v1585_v50, %v1568_v45  ;;  %v1452_v24 = vcombine.low %v1391_v14, %v1390_v36  ;;  %v1467_v0 = vrot.slane %v1453_v15, %v2805_v31  ;;  %v1503_v10 = vrot.slane %v1417_v30, %v2805_v31 }
 0x30c   :  { %v1505_v32 = vrot.slane %v1451_v16, 1  ;;  %v1477_v34 = vrot.slane %v1469_v37, %v2805_v31  ;;  %v1484_v41 = vrot.slane %v1470_v17, %v2805_v31  ;;  %v1590_v23 = vpack.c.bf16 %v1451_v16, %v1434_v12 }
 0x30d   :  { %2437 = vmatmul.mubr.bf16.vlgmr.msra.gmra.mrb[16].mxu1 %v1595_v22  ;;  %v1460_v21 = vrot.slane %v1452_v24, %v2805_v31  ;;  %v1512_v19 = vrot.slane %v1503_v10, 1 }
 0x30e   :  { %v1506_v25 = vsel %vm3319_vm4, %v1504_v28, %v1505_v32  ;;  %v1508_v26 = vsel %vm3320_vm5, %v1505_v32, %v1507_v56  ;;  %v1485_v27 = vcombine.low %v1477_v34, %v1484_v41  ;;  %2584 = vmatpush3.bf16.msra.mxu1 %v2926_v44  ;;  %2507 = vmatprep.mubr.msk.f32.mxu1 %vm3321_vm6, %v2672_v1 }
 0x30f   :  { %v1591_v36 = vpack.c.bf16 %v1508_v26, %v1506_v25  ;;  %v1468_v43 = vcombine.low %v1460_v21, %v1467_v0  ;;  %2585 = vmatprep.subr.bf16.mxu1 %v2675_v38 }
 0x310   :  { %v1510_v51 = vrot.slane %v1485_v27, 1 }
 0x311   :  { %1820 = vmatprep.mubr.bf16.mxu0 %v1591_v36  ;;  %v1509_v20 = vrot.slane %v1468_v43, 1  ;;  %v1593_v54 = vpack.c.bf16 %v1485_v27, %v1468_v43  ;;  %v2058_v43 = vld [vmem:[%s3303_s5] sm:$0x1] }
 0x312   :  { %1821 = vmatmul.mubr.bf16.vlgmr.msra.gmra.mrb[16].mxu0 %v1590_v23  ;;  %v1513_v31 = vsel %vm3322_vm7, %v1510_v51, %v1512_v19  ;;  %2587 = vmatpush3.bf16.msra.mxu1 %v2946_v57 }
 0x313   :  { %v1511_v35 = vsel %vm3323_vm8, %v1509_v20, %v1510_v51  ;;  %2560 = vmatpush3.bf16.msra.mxu0 %v2926_v44  ;;  %2588 = vmatprep.subr.bf16.mxu1 %v2675_v38  ;;  %v2170_v20 = vld [vmem:[%s3304_s6] ss:$0 sm:$0xff] }
 0x314   :  { %v1594_v53 = vpack.c.bf16 %v1513_v31, %v1511_v35  ;;  %2561 = vmatprep.subr.bf16.mxu0 %v2675_v38 }
 0x316   :  { %1828 = vmatprep.mubr.bf16.mxu0 %v1594_v53  ;;  %2590 = vmatpush3.bf16.msra.mxu1 %v2959_v2 }
 0x317   :  { %2563 = vmatpush3.bf16.msra.mxu0 %v2946_v57  ;;  %2591 = vmatprep.subr.bf16.mxu1 %v2675_v38 }
 0x318   :  { %2564 = vmatprep.subr.bf16.mxu0 %v2675_v38 }
 0x31a   :  { %1829 = vmatmul.mubr.bf16.gmra.mrb[20].mxu0 %v1593_v54  ;;  %2593 = vmatpush3.bf16.msra.mxu1 %v2972_v9 }
 0x31b   :  { %2566 = vmatpush3.bf16.msra.mxu0 %v2959_v2  ;;  %2472 = vmatprep.mubr.msk.f32.mxu0 %vm3321_vm6, %v2672_v1 }
 0x31c   :  { %2567 = vmatprep.subr.bf16.mxu0 %v2675_v38  ;;  %2594 = vmatprep.subr.bf16.mxu1 %v2675_v38 }
 0x31e   :  { %2596 = vmatpush3.bf16.msra.mxu1 %v2981_v18 }
 0x31f   :  { %2569 = vmatpush3.bf16.msra.mxu0 %v2972_v9  ;;  %2597 = vmatprep.subr.bf16.mxu1 %v2675_v38 }
 0x320   :  { %2570 = vmatprep.subr.bf16.mxu0 %v2675_v38 }
 0x322   :  { %2599 = vmatpush3.bf16.msra.mxu1 %v2995_v33 }
 0x323   :  { %2572 = vmatpush3.bf16.msra.mxu0 %v2981_v18  ;;  %2600 = vmatprep.subr.bf16.mxu1 %v2675_v38 }
 0x324   :  { %2573 = vmatprep.subr.bf16.mxu0 %v2675_v38 }
 0x326   :  { %2602 = vmatpush3.bf16.msra.mxu1 %v3003_v47 }
 0x327   :  { %2575 = vmatpush3.bf16.msra.mxu0 %v2995_v33  ;;  %2603 = vmatprep.subr.bf16.mxu1 %v2675_v38 }
 0x328   :  { %2576 = vmatprep.subr.bf16.mxu0 %v2675_v38 }
 0x32a   :  { %2605 = vmatpush3.bf16.msra.mxu1 %v3010_v52 }
 0x32b   :  { %2578 = vmatpush3.bf16.msra.mxu0 %v3003_v47 }
 0x32c   :  { %2579 = vmatprep.subr.bf16.mxu0 %v2675_v38 }
 0x32f   :  { %2581 = vmatpush3.bf16.msra.mxu0 %v3010_v52 }
 0x3e0   :  { %v2438_v1 = vpop.f32.mrb[16].mxu1 }
 0x3e1   :  { %v1871_v44 = vpop.f32.mrb[17].mxu1 }
 0x3e2   :  { %v2439_v57 = vpop.f32.mrb[18].mxu1 }
 0x3e3   :  { %v1874_v2 = vpop.f32.mrb[19].mxu1 }
 0x3e5   :  { %v2266_v9 = vpop.f32.mrb[16].mxu0 }
 0x3e6   :  { %v2267_v18 = vpop.f32.mrb[17].mxu0 }
 0x3e7   :  { %v2268_v55 = vadd.f32 %v2267_v18, %v2266_v9  ;;  %v2269_v33 = vpop.f32.mrb[18].mxu0 }
 0x3e8   :  { %v2270_v58 = vpop.f32.mrb[19].mxu0 }
 0x3e9   :  { %v1872_v59 = vadd.f32 %v2268_v55, %v1871_v44  ;;  %v2271_v30 = vadd.f32 %v2270_v58, %v2269_v33 }
 0x3eb   :  { %v1875_v39 = vadd.f32 %v2271_v30, %v1874_v2 }
 0x3ed   :  { %v2272_v60 = vpop.f32.mrb[20].mxu0  ;;  %v1886_v38 = vadd.f32 %v1875_v39, %v1872_v59 }
 0x3ee   :  { %v2273_v61 = vpop.f32.mrb[21].mxu0 }
 0x3ef   :  { %v2274_v62 = vadd.f32 %v2273_v61, %v2272_v60  ;;  %v2275_v47 = vpop.f32.mrb[22].mxu0 }
 0x3f0   :  { %v2276_v63 = vpop.f32.mrb[23].mxu0 }
 0x3f1   :  { %v1880_v3 = vadd.f32 %v2438_v1, %v2274_v62  ;;  %v2277_v52 = vadd.f32 %v2276_v63, %v2275_v47 }
 0x3f3   :  { %v1887_v4 = vadd.f32 %v1886_v38, %v1880_v3  ;;  %v1883_v5 = vadd.f32 %v2439_v57, %v2277_v52 }
 0x3f5   :  { %v1888_v6 = vadd.f32 %v1887_v4, %v1883_v5 }
 0x3f7   :  { %v1889_v7 = vrot.slane %v1888_v6, 4 }
 0x3f9   :  { %v1890_v8 = vadd.f32 %v1889_v7, %v1888_v6 }
 0x3fb   :  { %v1891_v40 = vrot.slane %v1890_v8, 2 }
 0x3fd   :  { %v1892_v46 = vadd.f32 %v1891_v40, %v1890_v8 }
 0x3ff   :  { %v1893_v11 = vrot.slane %v1892_v46, 1 }
 0x401   :  { %v1894_v12 = vadd.f32 %v1893_v11, %v1892_v46 }
 0x403   :  { %2473 = vmatmul.mubr.f32.vlgmr.msra.gmra.mrb[14].mxu0 %v1894_v12 }
 0x4d6   :  { %v1961_v13 = vpop.f32.mrb[14].mxu0 }
 0x4d7   :  { %v1965_v42 = vmul.f32 0.001953125, %v1961_v13  ;;  %v2474_v45 = vpop.f32.mrb[15].mxu0 }
 0x4d9   :  { %v1969_v48 = vrot.slane %v1965_v42, %v3086_v29 }
 0x4db   :  { %v1970_v49 = vsub.f32 %v1872_v59, %v1969_v48  ;;  %v1971_v50 = vsub.f32 %v1875_v39, %v1969_v48  ;;  %v1972_v14 = vsub.f32 %v1880_v3, %v1969_v48  ;;  %v1973_v15 = vsub.f32 %v1883_v5, %v1969_v48 }
 0x4dd   :  { %v1974_v16 = vmul.f32 %v1970_v49, %v1970_v49  ;;  %v1975_v28 = vmul.f32 %v1971_v50, %v1971_v50  ;;  %v1976_v37 = vmul.f32 %v1972_v14, %v1972_v14  ;;  %v1977_v22 = vmul.f32 %v1973_v15, %v1973_v15 }
 0x4df   :  { %v1978_v17 = vadd.f32 %v1975_v28, %v1974_v16 }
 0x4e1   :  { %v1979_v56 = vadd.f32 %v1978_v17, %v1976_v37 }
 0x4e3   :  { %v1980_v24 = vadd.f32 %v1979_v56, %v1977_v22 }
 0x4e5   :  { %v1981_v0 = vrot.slane %v1980_v24, 4 }
 0x4e7   :  { %v1982_v32 = vadd.f32 %v1981_v0, %v1980_v24 }
 0x4e9   :  { %v1983_v34 = vrot.slane %v1982_v32, 2 }
 0x4eb   :  { %v1984_v41 = vadd.f32 %v1983_v34, %v1982_v32 }
 0x4ed   :  { %v1985_v10 = vrot.slane %v1984_v41, 1 }
 0x4ef   :  { %v1986_v21 = vadd.f32 %v1985_v10, %v1984_v41 }
 0x4f1   :  { %2508 = vmatmul.mubr.f32.vlgmr.msra.gmra.mrb[14].mxu1 %v1986_v21 }
 0x5c4   :  { %v2053_v25 = vpop.f32.mrb[14].mxu1 }
 0x5c5   :  { %v2057_v26 = vmul.f32 0.001953125, %v2053_v25  ;;  %v2509_v27 = vpop.f32.mrb[15].mxu1 }
 0x5c7   :  { %v2059_v36 = vadd.f32 1e-05, %v2057_v26 }
 0x5c9   :  { %2670 = vrsqrt.f32 %v2059_v36 }
 0x5d3   :  { %v2671_v23 = vpop.eup %2670 }
 0x5d4   :  { %v2061_v51 = vmul.f32 %v2671_v23, %v2058_v43 }
 0x5d6   :  { %v2066_v19 = vrot.slane %v2061_v51, %v3086_v29 }
 0x5d8   :  { %v2068_v31 = vmul.f32 %v2066_v19, %v1970_v49  ;;  %v2069_v35 = vmul.f32 %v2066_v19, %v1971_v50  ;;  %v2070_v53 = vmul.f32 %v2066_v19, %v1972_v14  ;;  %v2071_v54 = vmul.f32 %v2066_v19, %v1973_v15 }
 0x5da   :  { %v2079_v1 = vadd.f32 %v2170_v20, %v2068_v31  ;;  %v2080_v44 = vadd.f32 %v2170_v20, %v2069_v35  ;;  %v2081_v57 = vadd.f32 %v2170_v20, %v2070_v53  ;;  %v2082_v2 = vadd.f32 %v2170_v20, %v2071_v54 }
 0x5dc   :  { %v2083_v9 = vmax.f32 %v2079_v1, 0.0  ;;  %v2084_v18 = vmax.f32 %v2080_v44, 0.0  ;;  %v2085_v55 = vmax.f32 %v2081_v57, 0.0  ;;  %v2086_v33 = vmax.f32 %v2082_v2, 0.0 }
 0x5de   :  { %2087 = vst [vmem:[%s3305_s7] sm:$0xff] %v2083_v9  ;;  %2088 = vst [vmem:[%s3305_s7 + $0x8] sm:$0xff] %v2084_v18 }
 0x5df   :  { %2089 = vst [vmem:[%s3305_s7 + $0x10] sm:$0xff] %v2085_v55  ;;  %2090 = vst [vmem:[%s3305_s7 + $0x18] sm:$0xff] %v2086_v33 }

</bundles_post_ra>
